<compile_context>
chip_gen: v7x
topology: tpu7x:2x2x1
jax: 0.10.0
libtpu: 0.0.40
codegen_flags: <defaults>
</compile_context>

<pallas_src>
import jax
import jax.numpy as jnp
from jax import lax
from jax.experimental import pallas as pl
from jax.experimental.pallas import tpu as pltpu

# ----------------------- model config (small, synthetic) --------------------
B, S, H = 2, 8, 32          # batch, seq, hidden
NUM_HEADS = 2
HEAD_DIM = H // NUM_HEADS
INTER = 64                  # FFN intermediate size
NUM_LAYERS = 2
VOCAB = 50
N_CLASSES = 3
LN_EPS = 1e-12
LOGIT_PAD = 128             # lane-dense classifier output, sliced to N_CLASSES outside

# vecs_h slab rows (per layer): [bo, ln1_g, ln1_b, b2, ln2_g, ln2_b, pad, pad]
ROW_BO, ROW_LN1G, ROW_LN1B, ROW_B2, ROW_LN2G, ROW_LN2B = 0, 1, 2, 3, 4, 5


def _layer_norm(x, gamma, beta):
    mu = jnp.mean(x, axis=-1, keepdims=True)
    var = jnp.mean((x - mu) ** 2, axis=-1, keepdims=True)
    return (x - mu) * lax.rsqrt(var + LN_EPS) * gamma + beta


# ------------------------- fully fused forward kernel ------------------------
def fused_bert_kernel(x_ref, mask_ref,
                      wqkv_ref, bqkv_ref, wo_ref, vecs_ref,
                      w1_ref, b1_ref, w2_ref,
                      poolb_ref, wp_ref, wc_ref, bc_ref,
                      out_ref, x_vmem):
    x = x_ref[...]                                    # (B*S, H) f32, embedding-LN'd
    mask = mask_ref[...]                              # (B*S, B*S) f32 additive mask
    scale = 1.0 / jnp.sqrt(jnp.float32(HEAD_DIM))

    # Statically unrolled encoder layers; all weights fully resident in VMEM.
    for l in range(NUM_LAYERS):
        vecs = vecs_ref[l]                            # (8, H) f32 bias/LN slab

        # ---- multi-head self-attention: one fused QKV matmul (bf16 -> f32 acc)
        qkv = (jnp.dot(x.astype(jnp.bfloat16), wqkv_ref[l],
                       preferred_element_type=jnp.float32)
               + bqkv_ref[l])                         # (B*S, 3H) f32

        ctx_heads = []
        for h in range(NUM_HEADS):
            q_h = qkv[:, h * HEAD_DIM:(h + 1) * HEAD_DIM].astype(jnp.bfloat16)
            k_h = qkv[:, H + h * HEAD_DIM:H + (h + 1) * HEAD_DIM].astype(jnp.bfloat16)
            v_h = qkv[:, 2 * H + h * HEAD_DIM:2 * H + (h + 1) * HEAD_DIM].astype(jnp.bfloat16)
            # (B*S, B*S) scores via one 2-D matmul; block-diagonal mask blocks
            # cross-batch keys and padded keys (BERT is bidirectional: no causal mask).
            scores = lax.dot_general(
                q_h, k_h, dimension_numbers=(((1,), (1,)), ((), ())),
                preferred_element_type=jnp.float32) * scale + mask
            scores = scores - jnp.max(scores, axis=-1, keepdims=True)
            p = jnp.exp(scores)
            p = p * pl.reciprocal(jnp.sum(p, axis=-1, keepdims=True), approx=True)
            ctx_heads.append(jnp.dot(p.astype(jnp.bfloat16), v_h,
                                     preferred_element_type=jnp.float32))
        ctx = jnp.concatenate(ctx_heads, axis=-1)     # (B*S, H) f32, one concat

        attn = (jnp.dot(ctx.astype(jnp.bfloat16), wo_ref[l],
                        preferred_element_type=jnp.float32)
                + vecs[ROW_BO:ROW_BO + 1, :])
        x1 = _layer_norm(x + attn,
                         vecs[ROW_LN1G:ROW_LN1G + 1, :],
                         vecs[ROW_LN1B:ROW_LN1B + 1, :])

        # ------------------------------ feed-forward --------------------------
        # TODO(synk): HF bert-base uses exact erf GELU; tanh approximation kept
        # for robust Mosaic lowering (small numeric drift).
        hmid = jax.nn.gelu(
            jnp.dot(x1.astype(jnp.bfloat16), w1_ref[l],
                    preferred_element_type=jnp.float32) + b1_ref[l],
            approximate=True)
        ffn = (jnp.dot(hmid.astype(jnp.bfloat16), w2_ref[l],
                       preferred_element_type=jnp.float32)
               + vecs[ROW_B2:ROW_B2 + 1, :])
        x = _layer_norm(x1 + ffn,
                        vecs[ROW_LN2G:ROW_LN2G + 1, :],
                        vecs[ROW_LN2B:ROW_LN2B + 1, :])

    # ---- pooler (tanh on CLS rows) + dropout(eval) + classifier ----
    x_vmem[...] = x
    cls = x_vmem[pl.ds(0, B, stride=S), :]            # (B, H) one strided CLS gather
    pooled = jnp.tanh(
        jnp.dot(cls.astype(jnp.bfloat16), wp_ref[...],
                preferred_element_type=jnp.float32)
        + poolb_ref[...])
    # TODO(synk): nn.Dropout(p=0.3) is treated as eval-mode identity here.
    out_ref[...] = (jnp.dot(pooled.astype(jnp.bfloat16), wc_ref[...],
                            preferred_element_type=jnp.float32)
                    + bc_ref[...])


# ------------------------------ full forward ---------------------------------
def causal_classifier_forward(input_ids, attention_mask, params):
    # Embedding gathers + embedding LayerNorm stay in plain JAX (data-dependent
    # gather + one tiny LN; keeps the kernel's first layer off a store->load dep).
    x = (params["word_emb"][input_ids]
         + params["pos_emb"][None, :, :]
         + params["type_emb"][0][None, None, :])                 # (B, S, H)
    x_flat = x.reshape(B * S, H).astype(jnp.float32)
    x_flat = _layer_norm(x_flat, params["emb_ln_g"], params["emb_ln_b"])

    # Lane-dense (B*S, B*S) additive mask: key-padding (-10000, matching HF)
    # inside a batch, hard block (-1e9) across batches.
    neg = (1.0 - attention_mask.astype(jnp.float32)) * -10000.0  # (B, S)
    neg_flat = neg.reshape(B * S)
    batch_of = jnp.arange(B * S, dtype=jnp.int32) // S
    same_batch = batch_of[:, None] == batch_of[None, :]
    mask2d = jnp.where(same_batch, neg_flat[None, :],
                       jnp.float32(-1e9)).astype(jnp.float32)    # (B*S, B*S)

    # bf16 weights fed to the MXU (f32 accumulation inside the kernel).
    wqkv = params["wqkv"].astype(jnp.bfloat16)
    wo = params["wo"].astype(jnp.bfloat16)
    w1 = params["w1"].astype(jnp.bfloat16)
    w2 = params["w2"].astype(jnp.bfloat16)
    wp = params["pooler_w"].astype(jnp.bfloat16)
    poolb = params["pooler_b"].reshape(1, H)

    # Lane-dense classifier weights/bias (pad N_CLASSES -> 128 lanes).
    wc_pad = (jnp.zeros((H, LOGIT_PAD), jnp.float32)
              .at[:, :N_CLASSES].set(params["cls_w"]).astype(jnp.bfloat16))
    bc_pad = jnp.zeros((1, LOGIT_PAD), jnp.float32).at[0, :N_CLASSES].set(params["cls_b"])

    # Single grid step: whole model resident, no per-layer step boundaries.
    # (For a scaled bert-base, re-introduce a layer-streaming "arbitrary" axis and a
    #  "parallel" batch axis for v7x's 2 TCs, plus an explicit vmem_limit_bytes.)
    grid_spec = pltpu.PrefetchScalarGridSpec(
        num_scalar_prefetch=0,
        grid=(1,),
        in_specs=[
            pl.BlockSpec((B * S, H), lambda i: (0, 0)),                  # activations
            pl.BlockSpec((B * S, B * S), lambda i: (0, 0)),              # additive mask
            pl.BlockSpec((NUM_LAYERS, H, 3 * H), lambda i: (0, 0, 0)),   # Wqkv (stacked)
            pl.BlockSpec((NUM_LAYERS, 1, 3 * H), lambda i: (0, 0, 0)),   # bqkv
            pl.BlockSpec((NUM_LAYERS, H, H), lambda i: (0, 0, 0)),       # Wo
            pl.BlockSpec((NUM_LAYERS, 8, H), lambda i: (0, 0, 0)),       # bias/LN slab
            pl.BlockSpec((NUM_LAYERS, H, INTER), lambda i: (0, 0, 0)),   # W1
            pl.BlockSpec((NUM_LAYERS, 1, INTER), lambda i: (0, 0, 0)),   # b1
            pl.BlockSpec((NUM_LAYERS, INTER, H), lambda i: (0, 0, 0)),   # W2
            pl.BlockSpec((1, H), lambda i: (0, 0)),                      # pooler b
            pl.BlockSpec((H, H), lambda i: (0, 0)),                      # pooler W
            pl.BlockSpec((H, LOGIT_PAD), lambda i: (0, 0)),              # classifier W
            pl.BlockSpec((1, LOGIT_PAD), lambda i: (0, 0)),              # classifier b
        ],
        out_specs=pl.BlockSpec((B, LOGIT_PAD), lambda i: (0, 0)),
        scratch_shapes=[pltpu.VMEM((B * S, H), jnp.float32)],            # CLS gather buffer
    )
    logits_pad = pl.pallas_call(
        fused_bert_kernel,
        out_shape=jax.ShapeDtypeStruct((B, LOGIT_PAD), jnp.float32),
        grid_spec=grid_spec,
        compiler_params=pltpu.CompilerParams(
            dimension_semantics=("arbitrary",)),
    )(x_flat, mask2d,
      wqkv, params["bqkv"], wo, params["vecs_h"],
      w1, params["b1"], w2,
      poolb, wp, wc_pad, bc_pad)

    return logits_pad[:, :N_CLASSES]


# --------------------------- deterministic init -------------------------------
def init_params(key):
    keys = iter(jax.random.split(key, 16))

    def dense(shape, scale=0.02):
        return jax.random.normal(next(keys), shape, jnp.float32) * scale

    # per-layer vector slab: [bo, ln1_g, ln1_b, b2, ln2_g, ln2_b, 0, 0]
    vecs = jnp.zeros((NUM_LAYERS, 8, H), jnp.float32)
    vecs = vecs.at[:, ROW_LN1G, :].set(1.0)
    vecs = vecs.at[:, ROW_LN2G, :].set(1.0)

    return {
        "word_emb": dense((VOCAB, H)),
        "pos_emb": dense((S, H)),
        "type_emb": dense((2, H)),
        "emb_ln_g": jnp.ones((H,), jnp.float32),
        "emb_ln_b": jnp.zeros((H,), jnp.float32),
        "wqkv": dense((NUM_LAYERS, H, 3 * H)),
        "bqkv": jnp.zeros((NUM_LAYERS, 1, 3 * H), jnp.float32),
        "wo": dense((NUM_LAYERS, H, H)),
        "vecs_h": vecs,
        "w1": dense((NUM_LAYERS, H, INTER)),
        "b1": jnp.zeros((NUM_LAYERS, 1, INTER), jnp.float32),
        "w2": dense((NUM_LAYERS, INTER, H)),
        "pooler_w": dense((H, H)),
        "pooler_b": jnp.zeros((H,), jnp.float32),
        "cls_w": dense((H, N_CLASSES)),
        "cls_b": jnp.zeros((N_CLASSES,), jnp.float32),
    }


if __name__ == "__main__":
    key = jax.random.PRNGKey(0)
    pkey, ikey = jax.random.split(key)
    params = init_params(pkey)

    input_ids = jax.random.randint(ikey, (B, S), 0, VOCAB, dtype=jnp.int32)
    attention_mask = jnp.array([[1, 1, 1, 1, 1, 1, 1, 1],
                                [1, 1, 1, 1, 1, 0, 0, 0]], dtype=jnp.int32)

    logits = jax.jit(causal_classifier_forward)(input_ids, attention_mask, params)
    logits = jax.block_until_ready(logits)
    assert logits.shape == (B, N_CLASSES)
    assert bool(jnp.all(jnp.isfinite(logits)))
    print("KERNEL_OK")
</pallas_src>

<mosaic_0001>
module attributes {stable_mosaic.version = 11 : i64} {
  func.func @fused_bert_kernel(%arg0: i32, %arg1: memref<16x32xf32, #tpu.memory_space<vmem>>, %arg2: memref<16x16xf32, #tpu.memory_space<vmem>>, %arg3: memref<2x32x96xbf16, #tpu.memory_space<vmem>>, %arg4: memref<2x1x96xf32, #tpu.memory_space<vmem>>, %arg5: memref<2x32x32xbf16, #tpu.memory_space<vmem>>, %arg6: memref<2x8x32xf32, #tpu.memory_space<vmem>>, %arg7: memref<2x32x64xbf16, #tpu.memory_space<vmem>>, %arg8: memref<2x1x64xf32, #tpu.memory_space<vmem>>, %arg9: memref<2x64x32xbf16, #tpu.memory_space<vmem>>, %arg10: memref<1x32xf32, #tpu.memory_space<vmem>>, %arg11: memref<32x32xbf16, #tpu.memory_space<vmem>>, %arg12: memref<32x128xbf16, #tpu.memory_space<vmem>>, %arg13: memref<1x128xf32, #tpu.memory_space<vmem>>, %arg14: memref<2x128xf32, #tpu.memory_space<vmem>>, %arg15: memref<16x32xf32, #tpu.memory_space<vmem>>) attributes {dimension_semantics = [#tpu.dimension_semantics<arbitrary>], iteration_bounds = array<i64: 1>, scalar_prefetch = 0 : i64, scratch_operands = 1 : i64, tpu.core_type = #tpu.core_type<tc>, window_params = [{pipeline_mode = #tpu.pipeline_mode<synchronous>, transform_indices = @transform_0, window_bounds = array<i64: 16, 32>}, {pipeline_mode = #tpu.pipeline_mode<synchronous>, transform_indices = @transform_1, window_bounds = array<i64: 16, 16>}, {pipeline_mode = #tpu.pipeline_mode<synchronous>, transform_indices = @transform_2, window_bounds = array<i64: 2, 32, 96>}, {pipeline_mode = #tpu.pipeline_mode<synchronous>, transform_indices = @transform_3, window_bounds = array<i64: 2, 1, 96>}, {pipeline_mode = #tpu.pipeline_mode<synchronous>, transform_indices = @transform_4, window_bounds = array<i64: 2, 32, 32>}, {pipeline_mode = #tpu.pipeline_mode<synchronous>, transform_indices = @transform_5, window_bounds = array<i64: 2, 8, 32>}, {pipeline_mode = #tpu.pipeline_mode<synchronous>, transform_indices = @transform_6, window_bounds = array<i64: 2, 32, 64>}, {pipeline_mode = #tpu.pipeline_mode<synchronous>, transform_indices = @transform_7, window_bounds = array<i64: 2, 1, 64>}, {pipeline_mode = #tpu.pipeline_mode<synchronous>, transform_indices = @transform_8, window_bounds = array<i64: 2, 64, 32>}, {pipeline_mode = #tpu.pipeline_mode<synchronous>, transform_indices = @transform_9, window_bounds = array<i64: 1, 32>}, {pipeline_mode = #tpu.pipeline_mode<synchronous>, transform_indices = @transform_10, window_bounds = array<i64: 32, 32>}, {pipeline_mode = #tpu.pipeline_mode<synchronous>, transform_indices = @transform_11, window_bounds = array<i64: 32, 128>}, {pipeline_mode = #tpu.pipeline_mode<synchronous>, transform_indices = @transform_12, window_bounds = array<i64: 1, 128>}, {pipeline_mode = #tpu.pipeline_mode<synchronous>, transform_indices = @transform_13, window_bounds = array<i64: 2, 128>}]} {
    %c0 = arith.constant 0 : index
    %c0_0 = arith.constant 0 : index
    %0 = vector.load %arg1[%c0, %c0_0] : memref<16x32xf32, #tpu.memory_space<vmem>>, vector<16x32xf32>
    %c0_1 = arith.constant 0 : index
    %c0_2 = arith.constant 0 : index
    %1 = vector.load %arg2[%c0_1, %c0_2] : memref<16x16xf32, #tpu.memory_space<vmem>>, vector<16x16xf32>
    %cst = arith.constant 1.600000e+01 : f32
    %2 = math.sqrt %cst : f32
    %cst_3 = arith.constant 1.000000e+00 : f32
    %3 = arith.divf %cst_3, %2 : f32
    %c0_4 = arith.constant 0 : index
    %c0_5 = arith.constant 0 : index
    %c0_6 = arith.constant 0 : index
    %4 = vector.load %arg6[%c0_4, %c0_5, %c0_6] : memref<2x8x32xf32, #tpu.memory_space<vmem>>, vector<1x8x32xf32>
    %5 = vector.shape_cast %4 : vector<1x8x32xf32> to vector<8x32xf32>
    %6 = arith.truncf %0 : vector<16x32xf32> to vector<16x32xbf16>
    %c0_7 = arith.constant 0 : index
    %c0_8 = arith.constant 0 : index
    %c0_9 = arith.constant 0 : index
    %7 = vector.load %arg3[%c0_7, %c0_8, %c0_9] : memref<2x32x96xbf16, #tpu.memory_space<vmem>>, vector<1x32x96xbf16>
    %8 = vector.shape_cast %7 : vector<1x32x96xbf16> to vector<32x96xbf16>
    %cst_10 = arith.constant dense<0.000000e+00> : vector<16x96xf32>
    %9 = tpu.matmul %6, %8, %cst_10 {dimension_numbers = #tpu.dot_dimension_numbers<[1], [0], [0], [1], [0, 0, 1, 1], [], []>} : vector<16x32xbf16>, vector<32x96xbf16>, vector<16x96xf32> -> vector<16x96xf32>
    %c0_11 = arith.constant 0 : index
    %c0_12 = arith.constant 0 : index
    %c0_13 = arith.constant 0 : index
    %10 = vector.load %arg4[%c0_11, %c0_12, %c0_13] : memref<2x1x96xf32, #tpu.memory_space<vmem>>, vector<1x1x96xf32>
    %11 = vector.shape_cast %10 : vector<1x1x96xf32> to vector<1x96xf32>
    %12 = vector.broadcast %11 : vector<1x96xf32> to vector<16x96xf32>
    %13 = arith.addf %9, %12 : vector<16x96xf32>
    %14 = vector.extract_strided_slice %13 {offsets = [0, 0], sizes = [16, 16], strides = [1, 1]} : vector<16x96xf32> to vector<16x16xf32>
    %15 = arith.truncf %14 : vector<16x16xf32> to vector<16x16xbf16>
    %16 = vector.extract_strided_slice %13 {offsets = [0, 32], sizes = [16, 16], strides = [1, 1]} : vector<16x96xf32> to vector<16x16xf32>
    %17 = arith.truncf %16 : vector<16x16xf32> to vector<16x16xbf16>
    %18 = vector.extract_strided_slice %13 {offsets = [0, 64], sizes = [16, 16], strides = [1, 1]} : vector<16x96xf32> to vector<16x16xf32>
    %19 = arith.truncf %18 : vector<16x16xf32> to vector<16x16xbf16>
    %cst_14 = arith.constant dense<0.000000e+00> : vector<16x16xf32>
    %20 = tpu.matmul %15, %17, %cst_14 {dimension_numbers = #tpu.dot_dimension_numbers<[1], [1], [0], [0], [0, 0, 1, 0], [], []>} : vector<16x16xbf16>, vector<16x16xbf16>, vector<16x16xf32> -> vector<16x16xf32>
    %21 = vector.broadcast %3 : f32 to vector<16x16xf32>
    %22 = arith.mulf %20, %21 : vector<16x16xf32>
    %23 = arith.addf %22, %1 : vector<16x16xf32>
    %cst_15 = arith.constant dense<0xFF800000> : vector<16xf32>
    %24 = vector.multi_reduction <maximumf>, %23, %cst_15 [1] : vector<16x16xf32> to vector<16xf32>
    %25 = vector.shape_cast %24 : vector<16xf32> to vector<16x1xf32>
    %26 = vector.broadcast %25 : vector<16x1xf32> to vector<16x16xf32>
    %27 = arith.subf %23, %26 : vector<16x16xf32>
    %28 = math.exp %27 : vector<16x16xf32>
    %cst_16 = arith.constant dense<0.000000e+00> : vector<16xf32>
    %29 = vector.multi_reduction <add>, %28, %cst_16 [1] : vector<16x16xf32> to vector<16xf32>
    %30 = vector.shape_cast %29 : vector<16xf32> to vector<16x1xf32>
    %31 = tpu.reciprocal %30 {approx = true} : vector<16x1xf32> -> vector<16x1xf32>
    %32 = vector.broadcast %31 : vector<16x1xf32> to vector<16x16xf32>
    %33 = arith.mulf %28, %32 : vector<16x16xf32>
    %34 = arith.truncf %33 : vector<16x16xf32> to vector<16x16xbf16>
    %cst_17 = arith.constant dense<0.000000e+00> : vector<16x16xf32>
    %35 = tpu.matmul %34, %19, %cst_17 {dimension_numbers = #tpu.dot_dimension_numbers<[1], [0], [0], [1], [0, 0, 1, 1], [], []>} : vector<16x16xbf16>, vector<16x16xbf16>, vector<16x16xf32> -> vector<16x16xf32>
    %36 = vector.extract_strided_slice %13 {offsets = [0, 16], sizes = [16, 16], strides = [1, 1]} : vector<16x96xf32> to vector<16x16xf32>
    %37 = arith.truncf %36 : vector<16x16xf32> to vector<16x16xbf16>
    %38 = vector.extract_strided_slice %13 {offsets = [0, 48], sizes = [16, 16], strides = [1, 1]} : vector<16x96xf32> to vector<16x16xf32>
    %39 = arith.truncf %38 : vector<16x16xf32> to vector<16x16xbf16>
    %40 = vector.extract_strided_slice %13 {offsets = [0, 80], sizes = [16, 16], strides = [1, 1]} : vector<16x96xf32> to vector<16x16xf32>
    %41 = arith.truncf %40 : vector<16x16xf32> to vector<16x16xbf16>
    %cst_18 = arith.constant dense<0.000000e+00> : vector<16x16xf32>
    %42 = tpu.matmul %37, %39, %cst_18 {dimension_numbers = #tpu.dot_dimension_numbers<[1], [1], [0], [0], [0, 0, 1, 0], [], []>} : vector<16x16xbf16>, vector<16x16xbf16>, vector<16x16xf32> -> vector<16x16xf32>
    %43 = vector.broadcast %3 : f32 to vector<16x16xf32>
    %44 = arith.mulf %42, %43 : vector<16x16xf32>
    %45 = arith.addf %44, %1 : vector<16x16xf32>
    %cst_19 = arith.constant dense<0xFF800000> : vector<16xf32>
    %46 = vector.multi_reduction <maximumf>, %45, %cst_19 [1] : vector<16x16xf32> to vector<16xf32>
    %47 = vector.shape_cast %46 : vector<16xf32> to vector<16x1xf32>
    %48 = vector.broadcast %47 : vector<16x1xf32> to vector<16x16xf32>
    %49 = arith.subf %45, %48 : vector<16x16xf32>
    %50 = math.exp %49 : vector<16x16xf32>
    %cst_20 = arith.constant dense<0.000000e+00> : vector<16xf32>
    %51 = vector.multi_reduction <add>, %50, %cst_20 [1] : vector<16x16xf32> to vector<16xf32>
    %52 = vector.shape_cast %51 : vector<16xf32> to vector<16x1xf32>
    %53 = tpu.reciprocal %52 {approx = true} : vector<16x1xf32> -> vector<16x1xf32>
    %54 = vector.broadcast %53 : vector<16x1xf32> to vector<16x16xf32>
    %55 = arith.mulf %50, %54 : vector<16x16xf32>
    %56 = arith.truncf %55 : vector<16x16xf32> to vector<16x16xbf16>
    %cst_21 = arith.constant dense<0.000000e+00> : vector<16x16xf32>
    %57 = tpu.matmul %56, %41, %cst_21 {dimension_numbers = #tpu.dot_dimension_numbers<[1], [0], [0], [1], [0, 0, 1, 1], [], []>} : vector<16x16xbf16>, vector<16x16xbf16>, vector<16x16xf32> -> vector<16x16xf32>
    %58 = tpu.concatenate %35, %57 in 1 : vector<16x16xf32>, vector<16x16xf32> -> vector<16x32xf32>
    %59 = arith.truncf %58 : vector<16x32xf32> to vector<16x32xbf16>
    %c0_22 = arith.constant 0 : index
    %c0_23 = arith.constant 0 : index
    %c0_24 = arith.constant 0 : index
    %60 = vector.load %arg5[%c0_22, %c0_23, %c0_24] : memref<2x32x32xbf16, #tpu.memory_space<vmem>>, vector<1x32x32xbf16>
    %61 = vector.shape_cast %60 : vector<1x32x32xbf16> to vector<32x32xbf16>
    %cst_25 = arith.constant dense<0.000000e+00> : vector<16x32xf32>
    %62 = tpu.matmul %59, %61, %cst_25 {dimension_numbers = #tpu.dot_dimension_numbers<[1], [0], [0], [1], [0, 0, 1, 1], [], []>} : vector<16x32xbf16>, vector<32x32xbf16>, vector<16x32xf32> -> vector<16x32xf32>
    %63 = vector.extract_strided_slice %5 {offsets = [0, 0], sizes = [1, 32], strides = [1, 1]} : vector<8x32xf32> to vector<1x32xf32>
    %64 = vector.broadcast %63 : vector<1x32xf32> to vector<16x32xf32>
    %65 = arith.addf %62, %64 : vector<16x32xf32>
    %66 = arith.addf %0, %65 : vector<16x32xf32>
    %67 = vector.extract_strided_slice %5 {offsets = [1, 0], sizes = [1, 32], strides = [1, 1]} : vector<8x32xf32> to vector<1x32xf32>
    %68 = vector.extract_strided_slice %5 {offsets = [2, 0], sizes = [1, 32], strides = [1, 1]} : vector<8x32xf32> to vector<1x32xf32>
    %cst_26 = arith.constant dense<0.000000e+00> : vector<16xf32>
    %69 = vector.multi_reduction <add>, %66, %cst_26 [1] : vector<16x32xf32> to vector<16xf32>
    %70 = vector.shape_cast %69 : vector<16xf32> to vector<16x1xf32>
    %cst_27 = arith.constant 3.200000e+01 : f32
    %71 = vector.broadcast %cst_27 : f32 to vector<16x1xf32>
    %72 = arith.divf %70, %71 : vector<16x1xf32>
    %73 = vector.broadcast %72 : vector<16x1xf32> to vector<16x32xf32>
    %74 = arith.subf %66, %73 : vector<16x32xf32>
    %75 = arith.mulf %74, %74 : vector<16x32xf32>
    %cst_28 = arith.constant dense<0.000000e+00> : vector<16xf32>
    %76 = vector.multi_reduction <add>, %75, %cst_28 [1] : vector<16x32xf32> to vector<16xf32>
    %77 = vector.shape_cast %76 : vector<16xf32> to vector<16x1xf32>
    %cst_29 = arith.constant 3.200000e+01 : f32
    %78 = vector.broadcast %cst_29 : f32 to vector<16x1xf32>
    %79 = arith.divf %77, %78 : vector<16x1xf32>
    %80 = vector.broadcast %72 : vector<16x1xf32> to vector<16x32xf32>
    %81 = arith.subf %66, %80 : vector<16x32xf32>
    %cst_30 = arith.constant 9.99999996E-13 : f32
    %82 = vector.broadcast %cst_30 : f32 to vector<16x1xf32>
    %83 = arith.addf %79, %82 : vector<16x1xf32>
    %84 = math.rsqrt %83 : vector<16x1xf32>
    %85 = vector.broadcast %84 : vector<16x1xf32> to vector<16x32xf32>
    %86 = arith.mulf %81, %85 : vector<16x32xf32>
    %87 = vector.broadcast %67 : vector<1x32xf32> to vector<16x32xf32>
    %88 = arith.mulf %86, %87 : vector<16x32xf32>
    %89 = vector.broadcast %68 : vector<1x32xf32> to vector<16x32xf32>
    %90 = arith.addf %88, %89 : vector<16x32xf32>
    %91 = arith.truncf %90 : vector<16x32xf32> to vector<16x32xbf16>
    %c0_31 = arith.constant 0 : index
    %c0_32 = arith.constant 0 : index
    %c0_33 = arith.constant 0 : index
    %92 = vector.load %arg7[%c0_31, %c0_32, %c0_33] : memref<2x32x64xbf16, #tpu.memory_space<vmem>>, vector<1x32x64xbf16>
    %93 = vector.shape_cast %92 : vector<1x32x64xbf16> to vector<32x64xbf16>
    %cst_34 = arith.constant dense<0.000000e+00> : vector<16x64xf32>
    %94 = tpu.matmul %91, %93, %cst_34 {dimension_numbers = #tpu.dot_dimension_numbers<[1], [0], [0], [1], [0, 0, 1, 1], [], []>} : vector<16x32xbf16>, vector<32x64xbf16>, vector<16x64xf32> -> vector<16x64xf32>
    %c0_35 = arith.constant 0 : index
    %c0_36 = arith.constant 0 : index
    %c0_37 = arith.constant 0 : index
    %95 = vector.load %arg8[%c0_35, %c0_36, %c0_37] : memref<2x1x64xf32, #tpu.memory_space<vmem>>, vector<1x1x64xf32>
    %96 = vector.shape_cast %95 : vector<1x1x64xf32> to vector<1x64xf32>
    %97 = vector.broadcast %96 : vector<1x64xf32> to vector<16x64xf32>
    %98 = arith.addf %94, %97 : vector<16x64xf32>
    %99 = arith.mulf %98, %98 : vector<16x64xf32>
    %100 = arith.mulf %98, %99 : vector<16x64xf32>
    %cst_38 = arith.constant 4.471500e-02 : f32
    %101 = vector.broadcast %cst_38 : f32 to vector<16x64xf32>
    %102 = arith.mulf %101, %100 : vector<16x64xf32>
    %103 = arith.addf %98, %102 : vector<16x64xf32>
    %cst_39 = arith.constant 0.797884583 : f32
    %104 = vector.broadcast %cst_39 : f32 to vector<16x64xf32>
    %105 = arith.mulf %104, %103 : vector<16x64xf32>
    %106 = math.tanh %105 : vector<16x64xf32>
    %cst_40 = arith.constant 1.000000e+00 : f32
    %107 = vector.broadcast %cst_40 : f32 to vector<16x64xf32>
    %108 = arith.addf %107, %106 : vector<16x64xf32>
    %cst_41 = arith.constant 5.000000e-01 : f32
    %109 = vector.broadcast %cst_41 : f32 to vector<16x64xf32>
    %110 = arith.mulf %109, %108 : vector<16x64xf32>
    %111 = arith.mulf %98, %110 : vector<16x64xf32>
    %112 = arith.truncf %111 : vector<16x64xf32> to vector<16x64xbf16>
    %c0_42 = arith.constant 0 : index
    %c0_43 = arith.constant 0 : index
    %c0_44 = arith.constant 0 : index
    %113 = vector.load %arg9[%c0_42, %c0_43, %c0_44] : memref<2x64x32xbf16, #tpu.memory_space<vmem>>, vector<1x64x32xbf16>
    %114 = vector.shape_cast %113 : vector<1x64x32xbf16> to vector<64x32xbf16>
    %cst_45 = arith.constant dense<0.000000e+00> : vector<16x32xf32>
    %115 = tpu.matmul %112, %114, %cst_45 {dimension_numbers = #tpu.dot_dimension_numbers<[1], [0], [0], [1], [0, 0, 1, 1], [], []>} : vector<16x64xbf16>, vector<64x32xbf16>, vector<16x32xf32> -> vector<16x32xf32>
    %116 = vector.extract_strided_slice %5 {offsets = [3, 0], sizes = [1, 32], strides = [1, 1]} : vector<8x32xf32> to vector<1x32xf32>
    %117 = vector.broadcast %116 : vector<1x32xf32> to vector<16x32xf32>
    %118 = arith.addf %115, %117 : vector<16x32xf32>
    %119 = arith.addf %90, %118 : vector<16x32xf32>
    %120 = vector.extract_strided_slice %5 {offsets = [4, 0], sizes = [1, 32], strides = [1, 1]} : vector<8x32xf32> to vector<1x32xf32>
    %121 = vector.extract_strided_slice %5 {offsets = [5, 0], sizes = [1, 32], strides = [1, 1]} : vector<8x32xf32> to vector<1x32xf32>
    %cst_46 = arith.constant dense<0.000000e+00> : vector<16xf32>
    %122 = vector.multi_reduction <add>, %119, %cst_46 [1] : vector<16x32xf32> to vector<16xf32>
    %123 = vector.shape_cast %122 : vector<16xf32> to vector<16x1xf32>
    %cst_47 = arith.constant 3.200000e+01 : f32
    %124 = vector.broadcast %cst_47 : f32 to vector<16x1xf32>
    %125 = arith.divf %123, %124 : vector<16x1xf32>
    %126 = vector.broadcast %125 : vector<16x1xf32> to vector<16x32xf32>
    %127 = arith.subf %119, %126 : vector<16x32xf32>
    %128 = arith.mulf %127, %127 : vector<16x32xf32>
    %cst_48 = arith.constant dense<0.000000e+00> : vector<16xf32>
    %129 = vector.multi_reduction <add>, %128, %cst_48 [1] : vector<16x32xf32> to vector<16xf32>
    %130 = vector.shape_cast %129 : vector<16xf32> to vector<16x1xf32>
    %cst_49 = arith.constant 3.200000e+01 : f32
    %131 = vector.broadcast %cst_49 : f32 to vector<16x1xf32>
    %132 = arith.divf %130, %131 : vector<16x1xf32>
    %133 = vector.broadcast %125 : vector<16x1xf32> to vector<16x32xf32>
    %134 = arith.subf %119, %133 : vector<16x32xf32>
    %cst_50 = arith.constant 9.99999996E-13 : f32
    %135 = vector.broadcast %cst_50 : f32 to vector<16x1xf32>
    %136 = arith.addf %132, %135 : vector<16x1xf32>
    %137 = math.rsqrt %136 : vector<16x1xf32>
    %138 = vector.broadcast %137 : vector<16x1xf32> to vector<16x32xf32>
    %139 = arith.mulf %134, %138 : vector<16x32xf32>
    %140 = vector.broadcast %120 : vector<1x32xf32> to vector<16x32xf32>
    %141 = arith.mulf %139, %140 : vector<16x32xf32>
    %142 = vector.broadcast %121 : vector<1x32xf32> to vector<16x32xf32>
    %143 = arith.addf %141, %142 : vector<16x32xf32>
    %c1 = arith.constant 1 : index
    %c0_51 = arith.constant 0 : index
    %c0_52 = arith.constant 0 : index
    %144 = vector.load %arg6[%c1, %c0_51, %c0_52] : memref<2x8x32xf32, #tpu.memory_space<vmem>>, vector<1x8x32xf32>
    %145 = vector.shape_cast %144 : vector<1x8x32xf32> to vector<8x32xf32>
    %146 = arith.truncf %143 : vector<16x32xf32> to vector<16x32xbf16>
    %c1_53 = arith.constant 1 : index
    %c0_54 = arith.constant 0 : index
    %c0_55 = arith.constant 0 : index
    %147 = vector.load %arg3[%c1_53, %c0_54, %c0_55] : memref<2x32x96xbf16, #tpu.memory_space<vmem>>, vector<1x32x96xbf16>
    %148 = vector.shape_cast %147 : vector<1x32x96xbf16> to vector<32x96xbf16>
    %cst_56 = arith.constant dense<0.000000e+00> : vector<16x96xf32>
    %149 = tpu.matmul %146, %148, %cst_56 {dimension_numbers = #tpu.dot_dimension_numbers<[1], [0], [0], [1], [0, 0, 1, 1], [], []>} : vector<16x32xbf16>, vector<32x96xbf16>, vector<16x96xf32> -> vector<16x96xf32>
    %c1_57 = arith.constant 1 : index
    %c0_58 = arith.constant 0 : index
    %c0_59 = arith.constant 0 : index
    %150 = vector.load %arg4[%c1_57, %c0_58, %c0_59] : memref<2x1x96xf32, #tpu.memory_space<vmem>>, vector<1x1x96xf32>
    %151 = vector.shape_cast %150 : vector<1x1x96xf32> to vector<1x96xf32>
    %152 = vector.broadcast %151 : vector<1x96xf32> to vector<16x96xf32>
    %153 = arith.addf %149, %152 : vector<16x96xf32>
    %154 = vector.extract_strided_slice %153 {offsets = [0, 0], sizes = [16, 16], strides = [1, 1]} : vector<16x96xf32> to vector<16x16xf32>
    %155 = arith.truncf %154 : vector<16x16xf32> to vector<16x16xbf16>
    %156 = vector.extract_strided_slice %153 {offsets = [0, 32], sizes = [16, 16], strides = [1, 1]} : vector<16x96xf32> to vector<16x16xf32>
    %157 = arith.truncf %156 : vector<16x16xf32> to vector<16x16xbf16>
    %158 = vector.extract_strided_slice %153 {offsets = [0, 64], sizes = [16, 16], strides = [1, 1]} : vector<16x96xf32> to vector<16x16xf32>
    %159 = arith.truncf %158 : vector<16x16xf32> to vector<16x16xbf16>
    %cst_60 = arith.constant dense<0.000000e+00> : vector<16x16xf32>
    %160 = tpu.matmul %155, %157, %cst_60 {dimension_numbers = #tpu.dot_dimension_numbers<[1], [1], [0], [0], [0, 0, 1, 0], [], []>} : vector<16x16xbf16>, vector<16x16xbf16>, vector<16x16xf32> -> vector<16x16xf32>
    %161 = vector.broadcast %3 : f32 to vector<16x16xf32>
    %162 = arith.mulf %160, %161 : vector<16x16xf32>
    %163 = arith.addf %162, %1 : vector<16x16xf32>
    %cst_61 = arith.constant dense<0xFF800000> : vector<16xf32>
    %164 = vector.multi_reduction <maximumf>, %163, %cst_61 [1] : vector<16x16xf32> to vector<16xf32>
    %165 = vector.shape_cast %164 : vector<16xf32> to vector<16x1xf32>
    %166 = vector.broadcast %165 : vector<16x1xf32> to vector<16x16xf32>
    %167 = arith.subf %163, %166 : vector<16x16xf32>
    %168 = math.exp %167 : vector<16x16xf32>
    %cst_62 = arith.constant dense<0.000000e+00> : vector<16xf32>
    %169 = vector.multi_reduction <add>, %168, %cst_62 [1] : vector<16x16xf32> to vector<16xf32>
    %170 = vector.shape_cast %169 : vector<16xf32> to vector<16x1xf32>
    %171 = tpu.reciprocal %170 {approx = true} : vector<16x1xf32> -> vector<16x1xf32>
    %172 = vector.broadcast %171 : vector<16x1xf32> to vector<16x16xf32>
    %173 = arith.mulf %168, %172 : vector<16x16xf32>
    %174 = arith.truncf %173 : vector<16x16xf32> to vector<16x16xbf16>
    %cst_63 = arith.constant dense<0.000000e+00> : vector<16x16xf32>
    %175 = tpu.matmul %174, %159, %cst_63 {dimension_numbers = #tpu.dot_dimension_numbers<[1], [0], [0], [1], [0, 0, 1, 1], [], []>} : vector<16x16xbf16>, vector<16x16xbf16>, vector<16x16xf32> -> vector<16x16xf32>
    %176 = vector.extract_strided_slice %153 {offsets = [0, 16], sizes = [16, 16], strides = [1, 1]} : vector<16x96xf32> to vector<16x16xf32>
    %177 = arith.truncf %176 : vector<16x16xf32> to vector<16x16xbf16>
    %178 = vector.extract_strided_slice %153 {offsets = [0, 48], sizes = [16, 16], strides = [1, 1]} : vector<16x96xf32> to vector<16x16xf32>
    %179 = arith.truncf %178 : vector<16x16xf32> to vector<16x16xbf16>
    %180 = vector.extract_strided_slice %153 {offsets = [0, 80], sizes = [16, 16], strides = [1, 1]} : vector<16x96xf32> to vector<16x16xf32>
    %181 = arith.truncf %180 : vector<16x16xf32> to vector<16x16xbf16>
    %cst_64 = arith.constant dense<0.000000e+00> : vector<16x16xf32>
    %182 = tpu.matmul %177, %179, %cst_64 {dimension_numbers = #tpu.dot_dimension_numbers<[1], [1], [0], [0], [0, 0, 1, 0], [], []>} : vector<16x16xbf16>, vector<16x16xbf16>, vector<16x16xf32> -> vector<16x16xf32>
    %183 = vector.broadcast %3 : f32 to vector<16x16xf32>
    %184 = arith.mulf %182, %183 : vector<16x16xf32>
    %185 = arith.addf %184, %1 : vector<16x16xf32>
    %cst_65 = arith.constant dense<0xFF800000> : vector<16xf32>
    %186 = vector.multi_reduction <maximumf>, %185, %cst_65 [1] : vector<16x16xf32> to vector<16xf32>
    %187 = vector.shape_cast %186 : vector<16xf32> to vector<16x1xf32>
    %188 = vector.broadcast %187 : vector<16x1xf32> to vector<16x16xf32>
    %189 = arith.subf %185, %188 : vector<16x16xf32>
    %190 = math.exp %189 : vector<16x16xf32>
    %cst_66 = arith.constant dense<0.000000e+00> : vector<16xf32>
    %191 = vector.multi_reduction <add>, %190, %cst_66 [1] : vector<16x16xf32> to vector<16xf32>
    %192 = vector.shape_cast %191 : vector<16xf32> to vector<16x1xf32>
    %193 = tpu.reciprocal %192 {approx = true} : vector<16x1xf32> -> vector<16x1xf32>
    %194 = vector.broadcast %193 : vector<16x1xf32> to vector<16x16xf32>
    %195 = arith.mulf %190, %194 : vector<16x16xf32>
    %196 = arith.truncf %195 : vector<16x16xf32> to vector<16x16xbf16>
    %cst_67 = arith.constant dense<0.000000e+00> : vector<16x16xf32>
    %197 = tpu.matmul %196, %181, %cst_67 {dimension_numbers = #tpu.dot_dimension_numbers<[1], [0], [0], [1], [0, 0, 1, 1], [], []>} : vector<16x16xbf16>, vector<16x16xbf16>, vector<16x16xf32> -> vector<16x16xf32>
    %198 = tpu.concatenate %175, %197 in 1 : vector<16x16xf32>, vector<16x16xf32> -> vector<16x32xf32>
    %199 = arith.truncf %198 : vector<16x32xf32> to vector<16x32xbf16>
    %c1_68 = arith.constant 1 : index
    %c0_69 = arith.constant 0 : index
    %c0_70 = arith.constant 0 : index
    %200 = vector.load %arg5[%c1_68, %c0_69, %c0_70] : memref<2x32x32xbf16, #tpu.memory_space<vmem>>, vector<1x32x32xbf16>
    %201 = vector.shape_cast %200 : vector<1x32x32xbf16> to vector<32x32xbf16>
    %cst_71 = arith.constant dense<0.000000e+00> : vector<16x32xf32>
    %202 = tpu.matmul %199, %201, %cst_71 {dimension_numbers = #tpu.dot_dimension_numbers<[1], [0], [0], [1], [0, 0, 1, 1], [], []>} : vector<16x32xbf16>, vector<32x32xbf16>, vector<16x32xf32> -> vector<16x32xf32>
    %203 = vector.extract_strided_slice %145 {offsets = [0, 0], sizes = [1, 32], strides = [1, 1]} : vector<8x32xf32> to vector<1x32xf32>
    %204 = vector.broadcast %203 : vector<1x32xf32> to vector<16x32xf32>
    %205 = arith.addf %202, %204 : vector<16x32xf32>
    %206 = arith.addf %143, %205 : vector<16x32xf32>
    %207 = vector.extract_strided_slice %145 {offsets = [1, 0], sizes = [1, 32], strides = [1, 1]} : vector<8x32xf32> to vector<1x32xf32>
    %208 = vector.extract_strided_slice %145 {offsets = [2, 0], sizes = [1, 32], strides = [1, 1]} : vector<8x32xf32> to vector<1x32xf32>
    %cst_72 = arith.constant dense<0.000000e+00> : vector<16xf32>
    %209 = vector.multi_reduction <add>, %206, %cst_72 [1] : vector<16x32xf32> to vector<16xf32>
    %210 = vector.shape_cast %209 : vector<16xf32> to vector<16x1xf32>
    %cst_73 = arith.constant 3.200000e+01 : f32
    %211 = vector.broadcast %cst_73 : f32 to vector<16x1xf32>
    %212 = arith.divf %210, %211 : vector<16x1xf32>
    %213 = vector.broadcast %212 : vector<16x1xf32> to vector<16x32xf32>
    %214 = arith.subf %206, %213 : vector<16x32xf32>
    %215 = arith.mulf %214, %214 : vector<16x32xf32>
    %cst_74 = arith.constant dense<0.000000e+00> : vector<16xf32>
    %216 = vector.multi_reduction <add>, %215, %cst_74 [1] : vector<16x32xf32> to vector<16xf32>
    %217 = vector.shape_cast %216 : vector<16xf32> to vector<16x1xf32>
    %cst_75 = arith.constant 3.200000e+01 : f32
    %218 = vector.broadcast %cst_75 : f32 to vector<16x1xf32>
    %219 = arith.divf %217, %218 : vector<16x1xf32>
    %220 = vector.broadcast %212 : vector<16x1xf32> to vector<16x32xf32>
    %221 = arith.subf %206, %220 : vector<16x32xf32>
    %cst_76 = arith.constant 9.99999996E-13 : f32
    %222 = vector.broadcast %cst_76 : f32 to vector<16x1xf32>
    %223 = arith.addf %219, %222 : vector<16x1xf32>
    %224 = math.rsqrt %223 : vector<16x1xf32>
    %225 = vector.broadcast %224 : vector<16x1xf32> to vector<16x32xf32>
    %226 = arith.mulf %221, %225 : vector<16x32xf32>
    %227 = vector.broadcast %207 : vector<1x32xf32> to vector<16x32xf32>
    %228 = arith.mulf %226, %227 : vector<16x32xf32>
    %229 = vector.broadcast %208 : vector<1x32xf32> to vector<16x32xf32>
    %230 = arith.addf %228, %229 : vector<16x32xf32>
    %231 = arith.truncf %230 : vector<16x32xf32> to vector<16x32xbf16>
    %c1_77 = arith.constant 1 : index
    %c0_78 = arith.constant 0 : index
    %c0_79 = arith.constant 0 : index
    %232 = vector.load %arg7[%c1_77, %c0_78, %c0_79] : memref<2x32x64xbf16, #tpu.memory_space<vmem>>, vector<1x32x64xbf16>
    %233 = vector.shape_cast %232 : vector<1x32x64xbf16> to vector<32x64xbf16>
    %cst_80 = arith.constant dense<0.000000e+00> : vector<16x64xf32>
    %234 = tpu.matmul %231, %233, %cst_80 {dimension_numbers = #tpu.dot_dimension_numbers<[1], [0], [0], [1], [0, 0, 1, 1], [], []>} : vector<16x32xbf16>, vector<32x64xbf16>, vector<16x64xf32> -> vector<16x64xf32>
    %c1_81 = arith.constant 1 : index
    %c0_82 = arith.constant 0 : index
    %c0_83 = arith.constant 0 : index
    %235 = vector.load %arg8[%c1_81, %c0_82, %c0_83] : memref<2x1x64xf32, #tpu.memory_space<vmem>>, vector<1x1x64xf32>
    %236 = vector.shape_cast %235 : vector<1x1x64xf32> to vector<1x64xf32>
    %237 = vector.broadcast %236 : vector<1x64xf32> to vector<16x64xf32>
    %238 = arith.addf %234, %237 : vector<16x64xf32>
    %239 = arith.mulf %238, %238 : vector<16x64xf32>
    %240 = arith.mulf %238, %239 : vector<16x64xf32>
    %cst_84 = arith.constant 4.471500e-02 : f32
    %241 = vector.broadcast %cst_84 : f32 to vector<16x64xf32>
    %242 = arith.mulf %241, %240 : vector<16x64xf32>
    %243 = arith.addf %238, %242 : vector<16x64xf32>
    %cst_85 = arith.constant 0.797884583 : f32
    %244 = vector.broadcast %cst_85 : f32 to vector<16x64xf32>
    %245 = arith.mulf %244, %243 : vector<16x64xf32>
    %246 = math.tanh %245 : vector<16x64xf32>
    %cst_86 = arith.constant 1.000000e+00 : f32
    %247 = vector.broadcast %cst_86 : f32 to vector<16x64xf32>
    %248 = arith.addf %247, %246 : vector<16x64xf32>
    %cst_87 = arith.constant 5.000000e-01 : f32
    %249 = vector.broadcast %cst_87 : f32 to vector<16x64xf32>
    %250 = arith.mulf %249, %248 : vector<16x64xf32>
    %251 = arith.mulf %238, %250 : vector<16x64xf32>
    %252 = arith.truncf %251 : vector<16x64xf32> to vector<16x64xbf16>
    %c1_88 = arith.constant 1 : index
    %c0_89 = arith.constant 0 : index
    %c0_90 = arith.constant 0 : index
    %253 = vector.load %arg9[%c1_88, %c0_89, %c0_90] : memref<2x64x32xbf16, #tpu.memory_space<vmem>>, vector<1x64x32xbf16>
    %254 = vector.shape_cast %253 : vector<1x64x32xbf16> to vector<64x32xbf16>
    %cst_91 = arith.constant dense<0.000000e+00> : vector<16x32xf32>
    %255 = tpu.matmul %252, %254, %cst_91 {dimension_numbers = #tpu.dot_dimension_numbers<[1], [0], [0], [1], [0, 0, 1, 1], [], []>} : vector<16x64xbf16>, vector<64x32xbf16>, vector<16x32xf32> -> vector<16x32xf32>
    %256 = vector.extract_strided_slice %145 {offsets = [3, 0], sizes = [1, 32], strides = [1, 1]} : vector<8x32xf32> to vector<1x32xf32>
    %257 = vector.broadcast %256 : vector<1x32xf32> to vector<16x32xf32>
    %258 = arith.addf %255, %257 : vector<16x32xf32>
    %259 = arith.addf %230, %258 : vector<16x32xf32>
    %260 = vector.extract_strided_slice %145 {offsets = [4, 0], sizes = [1, 32], strides = [1, 1]} : vector<8x32xf32> to vector<1x32xf32>
    %261 = vector.extract_strided_slice %145 {offsets = [5, 0], sizes = [1, 32], strides = [1, 1]} : vector<8x32xf32> to vector<1x32xf32>
    %cst_92 = arith.constant dense<0.000000e+00> : vector<16xf32>
    %262 = vector.multi_reduction <add>, %259, %cst_92 [1] : vector<16x32xf32> to vector<16xf32>
    %263 = vector.shape_cast %262 : vector<16xf32> to vector<16x1xf32>
    %cst_93 = arith.constant 3.200000e+01 : f32
    %264 = vector.broadcast %cst_93 : f32 to vector<16x1xf32>
    %265 = arith.divf %263, %264 : vector<16x1xf32>
    %266 = vector.broadcast %265 : vector<16x1xf32> to vector<16x32xf32>
    %267 = arith.subf %259, %266 : vector<16x32xf32>
    %268 = arith.mulf %267, %267 : vector<16x32xf32>
    %cst_94 = arith.constant dense<0.000000e+00> : vector<16xf32>
    %269 = vector.multi_reduction <add>, %268, %cst_94 [1] : vector<16x32xf32> to vector<16xf32>
    %270 = vector.shape_cast %269 : vector<16xf32> to vector<16x1xf32>
    %cst_95 = arith.constant 3.200000e+01 : f32
    %271 = vector.broadcast %cst_95 : f32 to vector<16x1xf32>
    %272 = arith.divf %270, %271 : vector<16x1xf32>
    %273 = vector.broadcast %265 : vector<16x1xf32> to vector<16x32xf32>
    %274 = arith.subf %259, %273 : vector<16x32xf32>
    %cst_96 = arith.constant 9.99999996E-13 : f32
    %275 = vector.broadcast %cst_96 : f32 to vector<16x1xf32>
    %276 = arith.addf %272, %275 : vector<16x1xf32>
    %277 = math.rsqrt %276 : vector<16x1xf32>
    %278 = vector.broadcast %277 : vector<16x1xf32> to vector<16x32xf32>
    %279 = arith.mulf %274, %278 : vector<16x32xf32>
    %280 = vector.broadcast %260 : vector<1x32xf32> to vector<16x32xf32>
    %281 = arith.mulf %279, %280 : vector<16x32xf32>
    %282 = vector.broadcast %261 : vector<1x32xf32> to vector<16x32xf32>
    %283 = arith.addf %281, %282 : vector<16x32xf32>
    %c0_97 = arith.constant 0 : index
    %c0_98 = arith.constant 0 : index
    %284 = vector.load %arg15[%c0_97, %c0_98] : memref<16x32xf32, #tpu.memory_space<vmem>>, vector<16x32xf32>
    tpu.vector_store %arg15[%c0_97, %c0_98], %283 {strides = array<i32>} : memref<16x32xf32, #tpu.memory_space<vmem>>, vector<16x32xf32>,
    %c0_99 = arith.constant 0 : index
    %c0_100 = arith.constant 0 : index
    %285 = tpu.strided_load %arg15[%c0_99, %c0_100] {strides = array<i32: 8, 1>} : memref<16x32xf32, #tpu.memory_space<vmem>>, vector<2x32xf32>
    %286 = arith.truncf %285 : vector<2x32xf32> to vector<2x32xbf16>
    %c0_101 = arith.constant 0 : index
    %c0_102 = arith.constant 0 : index
    %287 = vector.load %arg11[%c0_101, %c0_102] : memref<32x32xbf16, #tpu.memory_space<vmem>>, vector<32x32xbf16>
    %cst_103 = arith.constant dense<0.000000e+00> : vector<2x32xf32>
    %288 = tpu.matmul %286, %287, %cst_103 {dimension_numbers = #tpu.dot_dimension_numbers<[1], [0], [0], [1], [0, 0, 1, 1], [], []>} : vector<2x32xbf16>, vector<32x32xbf16>, vector<2x32xf32> -> vector<2x32xf32>
    %c0_104 = arith.constant 0 : index
    %c0_105 = arith.constant 0 : index
    %289 = vector.load %arg10[%c0_104, %c0_105] : memref<1x32xf32, #tpu.memory_space<vmem>>, vector<1x32xf32>
    %290 = vector.broadcast %289 : vector<1x32xf32> to vector<2x32xf32>
    %291 = arith.addf %288, %290 : vector<2x32xf32>
    %292 = math.tanh %291 : vector<2x32xf32>
    %293 = arith.truncf %292 : vector<2x32xf32> to vector<2x32xbf16>
    %c0_106 = arith.constant 0 : index
    %c0_107 = arith.constant 0 : index
    %294 = vector.load %arg12[%c0_106, %c0_107] : memref<32x128xbf16, #tpu.memory_space<vmem>>, vector<32x128xbf16>
    %cst_108 = arith.constant dense<0.000000e+00> : vector<2x128xf32>
    %295 = tpu.matmul %293, %294, %cst_108 {dimension_numbers = #tpu.dot_dimension_numbers<[1], [0], [0], [1], [0, 0, 1, 1], [], []>} : vector<2x32xbf16>, vector<32x128xbf16>, vector<2x128xf32> -> vector<2x128xf32>
    %c0_109 = arith.constant 0 : index
    %c0_110 = arith.constant 0 : index
    %296 = vector.load %arg13[%c0_109, %c0_110] : memref<1x128xf32, #tpu.memory_space<vmem>>, vector<1x128xf32>
    %297 = vector.broadcast %296 : vector<1x128xf32> to vector<2x128xf32>
    %298 = arith.addf %295, %297 : vector<2x128xf32>
    %c0_111 = arith.constant 0 : index
    %c0_112 = arith.constant 0 : index
    %299 = vector.load %arg14[%c0_111, %c0_112] : memref<2x128xf32, #tpu.memory_space<vmem>>, vector<2x128xf32>
    tpu.vector_store %arg14[%c0_111, %c0_112], %298 {strides = array<i32>} : memref<2x128xf32, #tpu.memory_space<vmem>>, vector<2x128xf32>,
    return
  }
  func.func @transform_0(%arg0: i32) -> (i32, i32) {
    %c0_i32 = arith.constant 0 : i32
    %c0_i32_0 = arith.constant 0 : i32
    %c0_i32_1 = arith.constant 0 : i32
    return %c0_i32, %c0_i32_0 : i32, i32
  }
  func.func @transform_1(%arg0: i32) -> (i32, i32) {
    %c0_i32 = arith.constant 0 : i32
    %c0_i32_0 = arith.constant 0 : i32
    %c0_i32_1 = arith.constant 0 : i32
    return %c0_i32, %c0_i32_0 : i32, i32
  }
  func.func @transform_2(%arg0: i32) -> (i32, i32, i32) {
    %c0_i32 = arith.constant 0 : i32
    %c0_i32_0 = arith.constant 0 : i32
    %c0_i32_1 = arith.constant 0 : i32
    %c0_i32_2 = arith.constant 0 : i32
    return %c0_i32, %c0_i32_0, %c0_i32_1 : i32, i32, i32
  }
  func.func @transform_3(%arg0: i32) -> (i32, i32, i32) {
    %c0_i32 = arith.constant 0 : i32
    %c0_i32_0 = arith.constant 0 : i32
    %c0_i32_1 = arith.constant 0 : i32
    %c0_i32_2 = arith.constant 0 : i32
    return %c0_i32, %c0_i32_0, %c0_i32_1 : i32, i32, i32
  }
  func.func @transform_4(%arg0: i32) -> (i32, i32, i32) {
    %c0_i32 = arith.constant 0 : i32
    %c0_i32_0 = arith.constant 0 : i32
    %c0_i32_1 = arith.constant 0 : i32
    %c0_i32_2 = arith.constant 0 : i32
    return %c0_i32, %c0_i32_0, %c0_i32_1 : i32, i32, i32
  }
  func.func @transform_5(%arg0: i32) -> (i32, i32, i32) {
    %c0_i32 = arith.constant 0 : i32
    %c0_i32_0 = arith.constant 0 : i32
    %c0_i32_1 = arith.constant 0 : i32
    %c0_i32_2 = arith.constant 0 : i32
    return %c0_i32, %c0_i32_0, %c0_i32_1 : i32, i32, i32
  }
  func.func @transform_6(%arg0: i32) -> (i32, i32, i32) {
    %c0_i32 = arith.constant 0 : i32
    %c0_i32_0 = arith.constant 0 : i32
    %c0_i32_1 = arith.constant 0 : i32
    %c0_i32_2 = arith.constant 0 : i32
    return %c0_i32, %c0_i32_0, %c0_i32_1 : i32, i32, i32
  }
  func.func @transform_7(%arg0: i32) -> (i32, i32, i32) {
    %c0_i32 = arith.constant 0 : i32
    %c0_i32_0 = arith.constant 0 : i32
    %c0_i32_1 = arith.constant 0 : i32
    %c0_i32_2 = arith.constant 0 : i32
    return %c0_i32, %c0_i32_0, %c0_i32_1 : i32, i32, i32
  }
  func.func @transform_8(%arg0: i32) -> (i32, i32, i32) {
    %c0_i32 = arith.constant 0 : i32
    %c0_i32_0 = arith.constant 0 : i32
    %c0_i32_1 = arith.constant 0 : i32
    %c0_i32_2 = arith.constant 0 : i32
    return %c0_i32, %c0_i32_0, %c0_i32_1 : i32, i32, i32
  }
  func.func @transform_9(%arg0: i32) -> (i32, i32) {
    %c0_i32 = arith.constant 0 : i32
    %c0_i32_0 = arith.constant 0 : i32
    %c0_i32_1 = arith.constant 0 : i32
    return %c0_i32, %c0_i32_0 : i32, i32
  }
  func.func @transform_10(%arg0: i32) -> (i32, i32) {
    %c0_i32 = arith.constant 0 : i32
    %c0_i32_0 = arith.constant 0 : i32
    %c0_i32_1 = arith.constant 0 : i32
    return %c0_i32, %c0_i32_0 : i32, i32
  }
  func.func @transform_11(%arg0: i32) -> (i32, i32) {
    %c0_i32 = arith.constant 0 : i32
    %c0_i32_0 = arith.constant 0 : i32
    %c0_i32_1 = arith.constant 0 : i32
    return %c0_i32, %c0_i32_0 : i32, i32
  }
  func.func @transform_12(%arg0: i32) -> (i32, i32) {
    %c0_i32 = arith.constant 0 : i32
    %c0_i32_0 = arith.constant 0 : i32
    %c0_i32_1 = arith.constant 0 : i32
    return %c0_i32, %c0_i32_0 : i32, i32
  }
  func.func @transform_13(%arg0: i32) -> (i32, i32) {
    %c0_i32 = arith.constant 0 : i32
    %c0_i32_0 = arith.constant 0 : i32
    %c0_i32_1 = arith.constant 0 : i32
    return %c0_i32, %c0_i32_0 : i32, i32
  }
}

</mosaic_0001>

<bundles_post_ra>
// kernel: causal_classifier_forward.1
= control target key start
LH: loop header
LB: loop body
LE: loop exit
PB: predicated region body
PF: predicated region fallthrough
CT: control target
= control target key end

     0   :  { %v1878_v1 = vmov 0.0   ;;  %vm1879_vm0 = vmmov 0   ;;  %vm75_vm1 = vcmask 261120   ;;  %s2309_s0 = inlined_call_operand.vmem [shape: f32[16,32], index: 0, kind: input, shape index: {}]   ;;  %s2310_s1 = inlined_call_operand.vmem [shape: f32[16,16], index: 1, kind: input, shape index: {}]   ;;  %s2311_s2 = inlined_call_operand.vmem [shape: bf16[2,32,96], index: 2, kind: input, shape index: {}]   ;;  %s2312_s3 = inlined_call_operand.vmem [shape: f32[2,1,96], index: 3, kind: input, shape index: {}]   ;;  %s2313_s4 = inlined_call_operand.vmem [shape: bf16[2,32,32], index: 4, kind: input, shape index: {}]   ;;  %s2314_s5 = inlined_call_operand.vmem [shape: f32[2,8,32], index: 5, kind: input, shape index: {}]   ;;  %s2315_s6 = inlined_call_operand.vmem [shape: bf16[2,32,64], index: 6, kind: input, shape index: {}]   ;;  %s2316_s7 = inlined_call_operand.vmem [shape: f32[2,1,64], index: 7, kind: input, shape index: {}]   ;;  %s2317_s8 = inlined_call_operand.vmem [shape: bf16[2,64,32], index: 8, kind: input, shape index: {}]   ;;  %s2318_s9 = inlined_call_operand.vmem [shape: f32[1,32], index: 9, kind: input, shape index: {}]   ;;  %s2319_s10 = inlined_call_operand.vmem [shape: bf16[32,32], index: 10, kind: input, shape index: {}]   ;;  %s2320_s11 = inlined_call_operand.vmem [shape: bf16[32,128], index: 11, kind: input, shape index: {}]   ;;  %s2321_s12 = inlined_call_operand.vmem [shape: f32[1,128], index: 12, kind: input, shape index: {}]   ;;  %s2322_s13 = inlined_call_operand.hbm [shape: f32[2,128], index: 13, kind: output, shape index: {}]  }
   0x1   :  { %v1772_v0 = vld [vmem:[%s2311_s2] sm:$0xff]   ;;  %1617 = vmatprep.subr.bf16.mxu0 %v1878_v1  ;;  %1625 = vmatprep.subr.bf16.mxu1 %v1878_v1  ;;  %v1773_v2 = vld [vmem:[%s2311_s2 + $0x8] sm:$0xff]  }
   0x2   :  { %1618 = vmatpush3.bf16.msra.mxu0 %v1772_v0  ;;  %1621 = vmatprep.mubr.msk.bf16.mxu0 %vm1879_vm0, %v1878_v1  ;;  %v1970_v3 = vld [vmem:[%s2309_s0] sm:$0xff]  ;;  %v1975_v4 = vld [vmem:[%s2309_s0 + $0x8] sm:$0xff] }
   0x3   :  { %1619 = vmatprep.subr.bf16.mxu0 %v1878_v1  ;;  %1627 = vmatprep.mubr.msk.bf16.mxu1 %vm1879_vm0, %v1878_v1  ;;  %v51_v5 = vpack.c.bf16 %v1975_v4, %v1970_v3 }
   0x6   :  { %1620 = vmatpush3.bf16.msra.mxu0 %v1773_v2 }
   0x7   :  { %1631 = vmatprep.subr.bf16.mxu0 %v1878_v1 }
   0x9   :  { %1622 = vmatmul.mubr.msk.bf16.vlgmr.msra.gmra.mrb[0].mxu0 %vm75_vm1, %v51_v5 }
   0xa   :  { %1633 = vmatprep.mubr.msk.bf16.mxu0 %vm1879_vm0, %v1878_v1 }
   0xb   :  { %18 = vsyncpa [#allocation4], 0  ;;  %v1496_v6 = vld [vmem:[%s2312_s3] ss:$0 sm:$0xff]  ;;  %s1880_s17 = smov 112   ;;  %s1881_s18 = smov 96  }
   0xc   :  { %s1882_s19 = smov 80   ;;  %vm124_vm2 = vcmask 130048   ;;  %v2011_v20 = vld [vmem:[%s2310_s1] sm:$0xff]  ;;  %v2016_v24 = vld [vmem:[%s2310_s1 + $0x8] sm:$0xff]  ;;  %s1883_s1 = smov 48   ;;  %vm610_vm3 = vcmask 523264  }
   0xd   :  { %s1884_s24 = smov 64   ;;  %s1885_s29 = smov 16  }
  0xdc   :  { %v113_v7 = vpop.f32.mrb[0].mxu0 }
  0xdd   :  { %v1623_v8 = vpop.f32.mrb[1].mxu0  ;;  %v114_v10 = vadd.f32 %v1496_v6, %v113_v7 }
  0xde   :  { %v116_v9 = vpop.f32.mrb[2].mxu0 }
  0xdf   :  { %v117_v11 = vadd.f32 %v1496_v6, %v116_v9  ;;  %v1624_v12 = vpop.f32.mrb[3].mxu0 }
  0xe1   :  { %v1989_v13 = vpack.c.bf16 %v117_v11, %v114_v10 }
  0xe3   :  { %246 = vrot.lane.b32.xlu1 %v1989_v13, %s1880_s17  ;;  %122 = vrot.lane.b32.xlu0 %v1989_v13, %s1881_s18 }
  0xe7   :  { %248 = vrot.lane.b32.xlu0 %v1989_v13, %s1882_s19 }
 0x155   :  { %v123_v14 = vpop.permute.xlu0 %122  ;;  %v247_v18 = vpop.permute.xlu1 %246 }
 0x156   :  { %v129_v15 = vsel %vm124_vm2, %v123_v14, 0 }
 0x157   :  { %1626 = vmatpush3.bf16.xpose.msra.mxu1 %v129_v15 }
 0x158   :  { %1637 = vmatprep.subr.bf16.mxu1 %v1878_v1 }
 0x159   :  { %v249_v16 = vpop.permute.xlu0 %248 }
 0x15a   :  { %v254_v17 = vsel %vm124_vm2, %v249_v16, 0  ;;  %v1774_v16 = vld [vmem:[%s2313_s4] sm:$0xff]  }
 0x15e   :  { %1628 = vmatmul.mubr.msk.bf16.vlgmr.msra.gmra.mrb[0].mxu1 %vm124_vm2, %v1989_v13 }
 0x15f   :  { %1638 = vmatpush3.bf16.xpose.msra.mxu1 %v254_v17  ;;  %1639 = vmatprep.mubr.msk.bf16.mxu1 %vm1879_vm0, %v1878_v1 }
 0x160   :  { %1649 = vmatprep.subr.bf16.mxu1 %v1878_v1 }
 0x166   :  { %1640 = vmatmul.mubr.msk.bf16.vlgmr.msra.gmra.mrb[4].mxu1 %vm124_vm2, %v247_v18 }
 0x167   :  { %1653 = vmatprep.mubr.msk.bf16.mxu1 %vm1879_vm0, %v1878_v1  ;;  %1650 = vmatpush3.bf16.msra.mxu1 %v1774_v16 }
 0x168   :  { %1651 = vmatprep.subr.bf16.mxu1 %v1878_v1 }
 0x231   :  { %v165_v19 = vpop.f32.mrb[0].mxu1 }
 0x232   :  { %v172_v21 = vmul.f32 0.25, %v165_v19  ;;  %v1629_v22 = vpop.f32.mrb[1].mxu1  ;;  %v1775_v19 = vld [vmem:[%s2313_s4 + $0x8] sm:$0xff]  }
 0x233   :  { %v168_v23 = vpop.f32.mrb[2].mxu1  ;;  %1652 = vmatpush3.bf16.msra.mxu1 %v1775_v19  ;;  %v1779_v19 = vld [vmem:[%s2317_s8 + $0x8] sm:$0xff]  }
 0x234   :  { %v173_v25 = vmul.f32 0.25, %v168_v23  ;;  %v1630_v26 = vpop.f32.mrb[3].mxu1  ;;  %v174_v27 = vadd.f32 %v172_v21, %v2011_v20  ;;  %1665 = vmatprep.subr.bf16.mxu1 %v1878_v1 }
 0x236   :  { %v176_v28 = vsel %vm124_vm2, %v174_v27, -inf  ;;  %v175_v29 = vadd.f32 %v173_v25, %v2016_v24 }
 0x237   :  { %177 = vmax.xlane.f32.xlu1 %v176_v28 }
 0x238   :  { %v179_v30 = vsel %vm124_vm2, %v175_v29, -inf }
 0x239   :  { %180 = vmax.xlane.f32.xlu0 %v179_v30  ;;  %v290_v31 = vpop.f32.mrb[4].mxu1 }
 0x23a   :  { %v297_v32 = vmul.f32 0.25, %v290_v31  ;;  %v1641_v33 = vpop.f32.mrb[5].mxu1 }
 0x23b   :  { %v293_v34 = vpop.f32.mrb[6].mxu1 }
 0x23c   :  { %v298_v35 = vmul.f32 0.25, %v293_v34  ;;  %v1642_v36 = vpop.f32.mrb[7].mxu1  ;;  %v299_v37 = vadd.f32 %v297_v32, %v2011_v20 }
 0x23e   :  { %v301_v38 = vsel %vm124_vm2, %v299_v37, -inf  ;;  %v300_v39 = vadd.f32 %v298_v35, %v2016_v24  ;;  %v386_v35 = vlaneseq }
 0x23f   :  { %302 = vmax.xlane.f32.xlu0 %v301_v38  ;;  %v2062_v38 = vld [vmem:[%s2314_s5] sm:$0xff] }
 0x240   :  { %v304_v40 = vsel %vm124_vm2, %v300_v39, -inf  ;;  %v2056_v36 = vshrl.u32 %v386_v35, 7 }
 0x241   :  { %305 = vmax.xlane.f32.xlu1 %v304_v40 }
 0x2c4   :  { %v178_v41 = vpop.xlane.xlu1 %177 }
 0x2c5   :  { %v182_v42 = vsub.f32 %v174_v27, %v178_v41 }
 0x2c6   :  { %v181_v43 = vpop.xlane.xlu0 %180 }
 0x2c7   :  { %v184_v44 = vmul.f32 1.442695, %v182_v42  ;;  %v183_v45 = vsub.f32 %v175_v29, %v181_v43 }
 0x2c9   :  { %1796 = vpow2.f32 %v184_v44  ;;  %v186_v46 = vmul.f32 1.442695, %v183_v45 }
 0x2cb   :  { %1798 = vpow2.f32 %v186_v46 }
 0x2cc   :  { %v303_v47 = vpop.xlane.xlu0 %302 }
 0x2cd   :  { %v307_v48 = vsub.f32 %v299_v37, %v303_v47  ;;  %v388_v37 = vsub.s32 0, %v2056_v36 }
 0x2ce   :  { %v306_v49 = vpop.xlane.xlu1 %305 }
 0x2cf   :  { %v309_v50 = vmul.f32 1.442695, %v307_v48  ;;  %v308_v51 = vsub.f32 %v300_v39, %v306_v49  ;;  %v389_v39 = vrot.slane %v2062_v38, %v388_v37 }
 0x2d1   :  { %1800 = vpow2.f32 %v309_v50  ;;  %v311_v52 = vmul.f32 1.442695, %v308_v51 }
 0x2d3   :  { %v1797_v53 = vpop.eup %1796  ;;  %1802 = vpow2.f32 %v311_v52 }
 0x2d4   :  { %v188_v54 = vsel %vm124_vm2, %v1797_v53, 0.0 }
 0x2d5   :  { %v1799_v55 = vpop.eup %1798  ;;  %189 = vadd.xlane.f32.xlu0 %v188_v54 }
 0x2d6   :  { %v191_v56 = vsel %vm124_vm2, %v1799_v55, 0.0 }
 0x2d7   :  { %192 = vadd.xlane.f32.xlu1 %v191_v56 }
 0x2db   :  { %v1801_v57 = vpop.eup %1800 }
 0x2dc   :  { %v313_v58 = vsel %vm124_vm2, %v1801_v57, 0.0 }
 0x2dd   :  { %v1803_v59 = vpop.eup %1802  ;;  %314 = vadd.xlane.f32.xlu0 %v313_v58 }
 0x2de   :  { %v316_v60 = vsel %vm124_vm2, %v1803_v59, 0.0 }
 0x2df   :  { %317 = vadd.xlane.f32.xlu1 %v316_v60 }
 0x2f0   :  { %324 = vrot.lane.b32.xlu1 %v1989_v13, %s1883_s1 }
 0x2f3   :  { %199 = vrot.lane.b32.xlu0 %v1989_v13, %s1884_s24 }
 0x362   :  { %v190_v61 = vpop.xlane.xlu0 %189 }
 0x363   :  { %1804 = vrcp.f32 %v190_v61 }
 0x364   :  { %v193_v62 = vpop.xlane.xlu1 %192 }
 0x365   :  { %1806 = vrcp.f32 %v193_v62 }
 0x36a   :  { %v315_v63 = vpop.xlane.xlu0 %314 }
 0x36b   :  { %1808 = vrcp.f32 %v315_v63 }
 0x36c   :  { %v318_v0 = vpop.xlane.xlu1 %317 }
 0x36d   :  { %v1805_v2 = vpop.eup %1804  ;;  %1810 = vrcp.f32 %v318_v0 }
 0x36e   :  { %v200_v5 = vpop.permute.xlu0 %199  ;;  %v196_v7 = vmul.f32 %v1805_v2, %v1797_v53 }
 0x36f   :  { %v1807_v6 = vpop.eup %1806  ;;  %1632 = vmatpush3.bf16.msra.mxu0 %v200_v5  ;;  %v477_v5 = vsub.s32 1, %v2056_v36 }
 0x370   :  { %v197_v8 = vmul.f32 %v1807_v6, %v1799_v55  ;;  %1643 = vmatprep.subr.bf16.mxu0 %v1878_v1  ;;  %v325_v10 = vpop.permute.xlu1 %324 }
 0x372   :  { %v198_v9 = vpack.c.bf16 %v197_v8, %v196_v7  ;;  %v478_v7 = vrot.slane %v2062_v38, %v477_v5 }
 0x374   :  { %1634 = vmatmul.mubr.msk.bf16.vlgmr.msra.gmra.mrb[4].mxu0 %vm124_vm2, %v198_v9  ;;  %v483_v9 = vsub.s32 2, %v2056_v36 }
 0x375   :  { %v1809_v11 = vpop.eup %1808  ;;  %1644 = vmatpush3.bf16.msra.mxu0 %v325_v10  ;;  %1645 = vmatprep.mubr.msk.bf16.mxu0 %vm1879_vm0, %v1878_v1 }
 0x376   :  { %1657 = vmatprep.subr.bf16.mxu0 %v1878_v1  ;;  %v321_v13 = vmul.f32 %v1809_v11, %v1801_v57 }
 0x377   :  { %v1811_v12 = vpop.eup %1810 }
 0x378   :  { %v322_v14 = vmul.f32 %v1811_v12, %v1803_v59  ;;  %v1777_v59 = vld [vmem:[%s2315_s6 + $0x8] sm:$0xff]  }
 0x37a   :  { %v323_v15 = vpack.c.bf16 %v322_v14, %v321_v13  ;;  %v484_v13 = vrot.slane %v2062_v38, %v483_v9 }
 0x37c   :  { %1646 = vmatmul.mubr.msk.bf16.vlgmr.msra.gmra.mrb[8].mxu0 %vm124_vm2, %v323_v15 }
 0x37d   :  { %1661 = vmatprep.mubr.msk.bf16.mxu0 %vm1879_vm0, %v1878_v1 }
 0x447   :  { %v239_v17 = vpop.f32.mrb[4].mxu0 }
 0x448   :  { %v1635_v18 = vpop.f32.mrb[5].mxu0 }
 0x449   :  { %v242_v21 = vpop.f32.mrb[6].mxu0  ;;  %v1778_v18 = vld [vmem:[%s2317_s8] sm:$0xff]  }
 0x44a   :  { %v1636_v22 = vpop.f32.mrb[7].mxu0 }
 0x44b   :  { %v1781_v22 = vld [vmem:[%s2317_s8 + $0x18] sm:$0xff]  }
 0x44f   :  { %v364_v23 = vpop.f32.mrb[8].mxu0 }
 0x450   :  { %v1647_v25 = vpop.f32.mrb[9].mxu0 }
 0x451   :  { %v367_v26 = vpop.f32.mrb[10].mxu0 }
 0x452   :  { %v1762_v27 = vpack.i.bf16 %v367_v26, %v364_v23  ;;  %v1648_v28 = vpop.f32.mrb[11].mxu0  ;;  %v1507_v23 = vld [vmem:[%s2316_s7] ss:$0 sm:$0xff] }
 0x454   :  { %1763 = vrot.lane.b32.xlu1 %v1762_v27, %s1885_s29 }
 0x4c6   :  { %v1764_v29 = vpop.permute.xlu1 %1763 }
 0x4c7   :  { %v1766_v30 = vunpack.i.h.bf16 %v1764_v29  ;;  %v1765_v31 = vunpack.i.l.bf16 %v1764_v29 }
 0x4c9   :  { %v380_v32 = vsel %vm124_vm2, %v242_v21, %v1766_v30  ;;  %v379_v33 = vsel %vm124_vm2, %v239_v17, %v1765_v31  ;;  %v1780_v21 = vld [vmem:[%s2317_s8 + $0x10] sm:$0xff]  }
 0x4ca   :  { %v381_v34 = vpack.c.bf16 %v380_v32, %v379_v33 }
 0x4cc   :  { %1654 = vmatmul.mubr.msk.bf16.vlgmr.msra.gmra.mrb[8].mxu1 %vm75_vm1, %v381_v34 }
 0x4cd   :  { %1673 = vmatprep.mubr.msk.bf16.mxu1 %vm1879_vm0, %v1878_v1  ;;  %1666 = vmatpush3.bf16.msra.mxu1 %v1778_v18 }
 0x4ce   :  { %1667 = vmatprep.subr.bf16.mxu1 %v1878_v1 }
 0x4d1   :  { %1668 = vmatpush3.bf16.msra.mxu1 %v1779_v19 }
 0x4d2   :  { %1669 = vmatprep.subr.bf16.mxu1 %v1878_v1 }
 0x4d5   :  { %1670 = vmatpush3.bf16.msra.mxu1 %v1780_v21 }
 0x4d6   :  { %1671 = vmatprep.subr.bf16.mxu1 %v1878_v1 }
 0x4d9   :  { %1672 = vmatpush3.bf16.msra.mxu1 %v1781_v22 }
 0x4da   :  { %1691 = vmatprep.subr.bf16.mxu1 %v1878_v1 }
 0x59f   :  { %v439_v40 = vpop.f32.mrb[8].mxu1 }
 0x5a0   :  { %v440_v41 = vadd.f32 %v439_v40, %v389_v39  ;;  %v1655_v42 = vpop.f32.mrb[9].mxu1 }
 0x5a1   :  { %v442_v43 = vpop.f32.mrb[10].mxu1 }
 0x5a2   :  { %v443_v44 = vadd.f32 %v442_v43, %v389_v39  ;;  %v1656_v45 = vpop.f32.mrb[11].mxu1  ;;  %v446_v46 = vadd.f32 %v440_v41, %v1970_v3 }
 0x5a4   :  { %v448_v47 = vsel %vm75_vm1, %v446_v46, 0.0  ;;  %v447_v48 = vadd.f32 %v443_v44, %v1975_v4  ;;  %v1776_v4 = vld [vmem:[%s2315_s6] sm:$0xff]  }
 0x5a5   :  { %449 = vadd.xlane.f32.xlu0 %v448_v47  ;;  %1658 = vmatpush3.bf16.msra.mxu0 %v1776_v4 }
 0x5a6   :  { %v451_v49 = vsel %vm75_vm1, %v447_v48, 0.0  ;;  %1659 = vmatprep.subr.bf16.mxu0 %v1878_v1 }
 0x5a7   :  { %452 = vadd.xlane.f32.xlu1 %v451_v49 }
 0x5a9   :  { %1660 = vmatpush3.bf16.msra.mxu0 %v1777_v59 }
 0x5aa   :  { %1677 = vmatprep.subr.bf16.mxu0 %v1878_v1 }
 0x632   :  { %v450_v50 = vpop.xlane.xlu0 %449 }
 0x633   :  { %v455_v51 = vmul.f32 0.03125, %v450_v50 }
 0x634   :  { %v453_v52 = vpop.xlane.xlu1 %452 }
 0x635   :  { %v457_v53 = vsub.f32 %v446_v46, %v455_v51  ;;  %v456_v54 = vmul.f32 0.03125, %v453_v52 }
 0x637   :  { %v458_v55 = vsub.f32 %v447_v48, %v456_v54  ;;  %v459_v56 = vmul.f32 %v457_v53, %v457_v53 }
 0x639   :  { %v461_v57 = vsel %vm75_vm1, %v459_v56, 0.0  ;;  %v460_v58 = vmul.f32 %v458_v55, %v458_v55 }
 0x63a   :  { %462 = vadd.xlane.f32.xlu0 %v461_v57 }
 0x63b   :  { %v464_v3 = vsel %vm75_vm1, %v460_v58, 0.0 }
 0x63e   :  { %465 = vadd.xlane.f32.xlu0 %v464_v3 }
 0x6c7   :  { %v463_v60 = vpop.xlane.xlu0 %462 }
 0x6c8   :  { %v467_v61 = vmul.f32 0.03125, %v463_v60 }
 0x6ca   :  { %v469_v62 = vadd.f32 1e-12, %v467_v61 }
 0x6cb   :  { %v466_v63 = vpop.xlane.xlu0 %465 }
 0x6cc   :  { %1812 = vrsqrt.f32 %v469_v62  ;;  %v468_v0 = vmul.f32 0.03125, %v466_v63 }
 0x6ce   :  { %v470_v2 = vadd.f32 1e-12, %v468_v0 }
 0x6d0   :  { %1814 = vrsqrt.f32 %v470_v2 }
 0x6d6   :  { %v1813_v6 = vpop.eup %1812 }
 0x6d7   :  { %v473_v8 = vmul.f32 %v1813_v6, %v457_v53  ;;  %v584_v53 = vsub.s32 3, %v2056_v36 }
 0x6d9   :  { %v479_v11 = vmul.f32 %v478_v7, %v473_v8  ;;  %v585_v54 = vrot.slane %v2062_v38, %v584_v53 }
 0x6da   :  { %v1815_v10 = vpop.eup %1814 }
 0x6db   :  { %v474_v12 = vmul.f32 %v1815_v10, %v458_v55  ;;  %v485_v15 = vadd.f32 %v484_v13, %v479_v11 }
 0x6dd   :  { %v480_v14 = vmul.f32 %v478_v7, %v474_v12 }
 0x6df   :  { %v486_v16 = vadd.f32 %v484_v13, %v480_v14  ;;  %v1782_v14 = vld [vmem:[%s2311_s2 + $0x10] sm:$0xff]  }
 0x6e1   :  { %v487_v17 = vpack.c.bf16 %v486_v16, %v485_v15 }
 0x6e3   :  { %1662 = vmatmul.mubr.msk.bf16.vlgmr.msra.gmra.mrb[12].mxu0 %vm75_vm1, %v487_v17 }
 0x6e4   :  { %1681 = vmatprep.mubr.msk.bf16.mxu0 %vm1879_vm0, %v1878_v1  ;;  %1678 = vmatpush3.bf16.msra.mxu0 %v1782_v14 }
 0x6e5   :  { %1679 = vmatprep.subr.bf16.mxu0 %v1878_v1 }
 0x7b6   :  { %v548_v25 = vpop.f32.mrb[12].mxu0 }
 0x7b7   :  { %v549_v26 = vadd.f32 %v1507_v23, %v548_v25  ;;  %v1663_v27 = vpop.f32.mrb[13].mxu0 }
 0x7b8   :  { %v551_v28 = vpop.f32.mrb[14].mxu0 }
 0x7b9   :  { %v555_v29 = vmul.f32 %v549_v26, %v549_v26  ;;  %v552_v30 = vadd.f32 %v1507_v23, %v551_v28  ;;  %v1664_v31 = vpop.f32.mrb[15].mxu0  ;;  %v685_v23 = vsub.s32 4, %v2056_v36 }
 0x7bb   :  { %v557_v32 = vmul.f32 %v555_v29, %v549_v26  ;;  %v556_v33 = vmul.f32 %v552_v30, %v552_v30  ;;  %v686_v25 = vrot.slane %v2062_v38, %v685_v23 }
 0x7bd   :  { %v559_v34 = vmul.f32 0.044715, %v557_v32  ;;  %v558_v35 = vmul.f32 %v556_v33, %v552_v30 }
 0x7bf   :  { %v561_v39 = vadd.f32 %v559_v34, %v549_v26  ;;  %v560_v40 = vmul.f32 0.044715, %v558_v35 }
 0x7c1   :  { %v563_v41 = vmul.f32 0.7978846, %v561_v39  ;;  %v562_v42 = vadd.f32 %v560_v40, %v552_v30  ;;  %v1522_v40 = vld [vmem:[%s2312_s3 + $0x1] ss:$0 sm:$0xff] }
 0x7c3   :  { %1816 = vtanh.f32 %v563_v41  ;;  %v564_v43 = vmul.f32 0.7978846, %v562_v42 }
 0x7c5   :  { %1818 = vtanh.f32 %v564_v43 }
 0x7cd   :  { %v1817_v44 = vpop.eup %1816 }
 0x7ce   :  { %v567_v45 = vadd.f32 1.0, %v1817_v44 }
 0x7cf   :  { %v1819_v46 = vpop.eup %1818 }
 0x7d0   :  { %v569_v47 = vmul.f32 0.5, %v567_v45  ;;  %v568_v48 = vadd.f32 1.0, %v1819_v46 }
 0x7d2   :  { %v570_v49 = vmul.f32 0.5, %v568_v48  ;;  %v571_v50 = vmul.f32 %v569_v47, %v549_v26  ;;  %v691_v26 = vsub.s32 5, %v2056_v36  ;;  %v1794_v36 = vld [vmem:[%s2320_s11] sm:$0xff]  }
 0x7d4   :  { %v572_v51 = vmul.f32 %v570_v49, %v552_v30  ;;  %v692_v32 = vrot.slane %v2062_v38, %v691_v26 }
 0x7d6   :  { %v573_v52 = vpack.c.bf16 %v572_v51, %v571_v50 }
 0x7d8   :  { %1674 = vmatmul.mubr.msk.bf16.vlgmr.msra.gmra.mrb[12].mxu1 %vm610_vm3, %v573_v52 }
 0x7d9   :  { %1693 = vmatprep.mubr.msk.bf16.mxu1 %vm1879_vm0, %v1878_v1 }
 0x8ab   :  { %v648_v55 = vpop.f32.mrb[12].mxu1 }
 0x8ac   :  { %v649_v56 = vadd.f32 %v648_v55, %v585_v54  ;;  %v1675_v57 = vpop.f32.mrb[13].mxu1 }
 0x8ad   :  { %v651_v58 = vpop.f32.mrb[14].mxu1 }
 0x8ae   :  { %v652_v3 = vadd.f32 %v651_v58, %v585_v54  ;;  %v1676_v4 = vpop.f32.mrb[15].mxu1  ;;  %v655_v59 = vadd.f32 %v649_v56, %v485_v15  ;;  %v1783_v15 = vld [vmem:[%s2311_s2 + $0x18] sm:$0xff]  }
 0x8af   :  { %1680 = vmatpush3.bf16.msra.mxu0 %v1783_v15 }
 0x8b0   :  { %v657_v60 = vsel %vm75_vm1, %v655_v59, 0.0  ;;  %v656_v61 = vadd.f32 %v652_v3, %v486_v16  ;;  %1685 = vmatprep.subr.bf16.mxu0 %v1878_v1 }
 0x8b1   :  { %658 = vadd.xlane.f32.xlu1 %v657_v60 }
 0x8b2   :  { %v660_v62 = vsel %vm75_vm1, %v656_v61, 0.0 }
 0x8b3   :  { %661 = vadd.xlane.f32.xlu0 %v660_v62 }
 0x93e   :  { %v659_v63 = vpop.xlane.xlu1 %658 }
 0x93f   :  { %v663_v0 = vmul.f32 0.03125, %v659_v63 }
 0x940   :  { %v662_v2 = vpop.xlane.xlu0 %661 }
 0x941   :  { %v665_v6 = vsub.f32 %v655_v59, %v663_v0  ;;  %v664_v7 = vmul.f32 0.03125, %v662_v2 }
 0x943   :  { %v666_v8 = vsub.f32 %v656_v61, %v664_v7  ;;  %v667_v10 = vmul.f32 %v665_v6, %v665_v6 }
 0x945   :  { %v669_v11 = vsel %vm75_vm1, %v667_v10, 0.0  ;;  %v668_v12 = vmul.f32 %v666_v8, %v666_v8 }
 0x946   :  { %670 = vadd.xlane.f32.xlu1 %v669_v11 }
 0x947   :  { %v672_v13 = vsel %vm75_vm1, %v668_v12, 0.0 }
 0x948   :  { %673 = vadd.xlane.f32.xlu0 %v672_v13 }
 0x9d3   :  { %v671_v16 = vpop.xlane.xlu1 %670 }
 0x9d4   :  { %v675_v17 = vmul.f32 0.03125, %v671_v16 }
 0x9d5   :  { %v674_v18 = vpop.xlane.xlu0 %673 }
 0x9d6   :  { %v677_v19 = vadd.f32 1e-12, %v675_v17  ;;  %v676_v21 = vmul.f32 0.03125, %v674_v18 }
 0x9d8   :  { %1820 = vrsqrt.f32 %v677_v19  ;;  %v678_v22 = vadd.f32 1e-12, %v676_v21 }
 0x9da   :  { %1822 = vrsqrt.f32 %v678_v22 }
 0x9e2   :  { %v1821_v27 = vpop.eup %1820 }
 0x9e3   :  { %v681_v28 = vmul.f32 %v1821_v27, %v665_v6 }
 0x9e4   :  { %v1823_v29 = vpop.eup %1822 }
 0x9e5   :  { %v687_v30 = vmul.f32 %v686_v25, %v681_v28  ;;  %v682_v31 = vmul.f32 %v1823_v29, %v666_v8 }
 0x9e7   :  { %v688_v33 = vmul.f32 %v686_v25, %v682_v31  ;;  %v2138_v34 = vadd.f32 %v692_v32, %v687_v30 }
 0x9e9   :  { %v2140_v35 = vadd.f32 %v692_v32, %v688_v33 }
 0x9eb   :  { %v697_v39 = vpack.c.bf16 %v2140_v35, %v2138_v34 }
 0x9ed   :  { %1682 = vmatmul.mubr.msk.bf16.vlgmr.msra.gmra.mrb[16].mxu0 %vm75_vm1, %v697_v39 }
 0x9ee   :  { %1687 = vmatprep.mubr.msk.bf16.mxu0 %vm1879_vm0, %v1878_v1 }
 0xac0   :  { %v760_v41 = vpop.f32.mrb[16].mxu0 }
 0xac1   :  { %v1683_v42 = vpop.f32.mrb[17].mxu0  ;;  %v761_v43 = vadd.f32 %v1522_v40, %v760_v41 }
 0xac2   :  { %v763_v38 = vpop.f32.mrb[18].mxu0 }
 0xac3   :  { %v764_v44 = vadd.f32 %v1522_v40, %v763_v38  ;;  %v1684_v45 = vpop.f32.mrb[19].mxu0 }
 0xac5   :  { %v2150_v46 = vpack.c.bf16 %v764_v44, %v761_v43 }
 0xac7   :  { %894 = vrot.lane.b32.xlu0 %v2150_v46, %s1882_s19  ;;  %769 = vrot.lane.b32.xlu1 %v2150_v46, %s1881_s18 }
 0xacb   :  { %892 = vrot.lane.b32.xlu1 %v2150_v46, %s1880_s17 }
 0xb39   :  { %v770_v47 = vpop.permute.xlu1 %769  ;;  %v895_v49 = vpop.permute.xlu0 %894 }
 0xb3a   :  { %v775_v48 = vsel %vm124_vm2, %v770_v47, 0  ;;  %v900_v50 = vsel %vm124_vm2, %v895_v49, 0 }
 0xb3b   :  { %1686 = vmatpush3.bf16.xpose.msra.mxu0 %v775_v48 }
 0xb3c   :  { %1697 = vmatprep.subr.bf16.mxu0 %v1878_v1 }
 0xb3d   :  { %v893_v51 = vpop.permute.xlu1 %892 }
 0xb42   :  { %1688 = vmatmul.mubr.msk.bf16.vlgmr.msra.gmra.mrb[20].mxu0 %vm124_vm2, %v2150_v46 }
 0xb43   :  { %1698 = vmatpush3.bf16.xpose.msra.mxu0 %v900_v50  ;;  %1699 = vmatprep.mubr.msk.bf16.mxu0 %vm1879_vm0, %v1878_v1 }
 0xb44   :  { %1709 = vmatprep.subr.bf16.mxu0 %v1878_v1 }
 0xb4a   :  { %1700 = vmatmul.mubr.msk.bf16.vlgmr.msra.gmra.mrb[24].mxu0 %vm124_vm2, %v893_v51 }
 0xb4b   :  { %1713 = vmatprep.mubr.msk.bf16.mxu0 %vm1879_vm0, %v1878_v1 }
 0xc15   :  { %v811_v52 = vpop.f32.mrb[20].mxu0 }
 0xc16   :  { %v818_v54 = vmul.f32 0.25, %v811_v52  ;;  %v1689_v55 = vpop.f32.mrb[21].mxu0 }
 0xc17   :  { %v814_v56 = vpop.f32.mrb[22].mxu0  ;;  %v1784_v55 = vld [vmem:[%s2313_s4 + $0x10] sm:$0xff]  }
 0xc18   :  { %v819_v57 = vmul.f32 0.25, %v814_v56  ;;  %v1690_v58 = vpop.f32.mrb[23].mxu0  ;;  %v820_v3 = vadd.f32 %v818_v54, %v2011_v20  ;;  %1710 = vmatpush3.bf16.msra.mxu0 %v1784_v55 }
 0xc19   :  { %1711 = vmatprep.subr.bf16.mxu0 %v1878_v1  ;;  %v1785_v58 = vld [vmem:[%s2313_s4 + $0x18] sm:$0xff]  }
 0xc1a   :  { %v822_v4 = vsel %vm124_vm2, %v820_v3, -inf  ;;  %v821_v59 = vadd.f32 %v819_v57, %v2016_v24 }
 0xc1b   :  { %823 = vmax.xlane.f32.xlu1 %v822_v4 }
 0xc1c   :  { %v825_v60 = vsel %vm124_vm2, %v821_v59, -inf  ;;  %1712 = vmatpush3.bf16.msra.mxu0 %v1785_v58  ;;  %v1542_v58 = vld [vmem:[%s2316_s7 + $0x1] ss:$0 sm:$0xff] }
 0xc1d   :  { %826 = vmax.xlane.f32.xlu0 %v825_v60  ;;  %v936_v61 = vpop.f32.mrb[24].mxu0  ;;  %1725 = vmatprep.subr.bf16.mxu0 %v1878_v1 }
 0xc1e   :  { %v943_v62 = vmul.f32 0.25, %v936_v61  ;;  %v1701_v63 = vpop.f32.mrb[25].mxu0 }
 0xc1f   :  { %v939_v0 = vpop.f32.mrb[26].mxu0 }
 0xc20   :  { %v944_v2 = vmul.f32 0.25, %v939_v0  ;;  %v1702_v6 = vpop.f32.mrb[27].mxu0  ;;  %v945_v7 = vadd.f32 %v943_v62, %v2011_v20 }
 0xc22   :  { %v947_v8 = vsel %vm124_vm2, %v945_v7, -inf  ;;  %v946_v10 = vadd.f32 %v944_v2, %v2016_v24 }
 0xc23   :  { %948 = vmax.xlane.f32.xlu0 %v947_v8 }
 0xc24   :  { %v950_v11 = vsel %vm124_vm2, %v946_v10, -inf }
 0xc25   :  { %951 = vmax.xlane.f32.xlu1 %v950_v11  ;;  %v2210_v11 = vld [vmem:[%s2314_s5 + $0x8] sm:$0xff] }
 0xca8   :  { %v824_v12 = vpop.xlane.xlu1 %823 }
 0xca9   :  { %v828_v13 = vsub.f32 %v820_v3, %v824_v12  ;;  %v1036_v12 = vrot.slane %v2210_v11, %v388_v37 }
 0xcaa   :  { %v827_v14 = vpop.xlane.xlu0 %826 }
 0xcab   :  { %v830_v15 = vmul.f32 1.442695, %v828_v13  ;;  %v829_v16 = vsub.f32 %v821_v59, %v827_v14 }
 0xcad   :  { %1824 = vpow2.f32 %v830_v15  ;;  %v832_v17 = vmul.f32 1.442695, %v829_v16 }
 0xcaf   :  { %1826 = vpow2.f32 %v832_v17 }
 0xcb0   :  { %v949_v18 = vpop.xlane.xlu0 %948 }
 0xcb1   :  { %v953_v19 = vsub.f32 %v945_v7, %v949_v18 }
 0xcb2   :  { %v952_v21 = vpop.xlane.xlu1 %951 }
 0xcb3   :  { %v955_v20 = vmul.f32 1.442695, %v953_v19  ;;  %v954_v22 = vsub.f32 %v946_v10, %v952_v21 }
 0xcb5   :  { %1828 = vpow2.f32 %v955_v20  ;;  %v957_v25 = vmul.f32 1.442695, %v954_v22 }
 0xcb7   :  { %v1825_v24 = vpop.eup %1824  ;;  %1830 = vpow2.f32 %v957_v25 }
 0xcb8   :  { %v834_v27 = vsel %vm124_vm2, %v1825_v24, 0.0 }
 0xcb9   :  { %v1827_v28 = vpop.eup %1826  ;;  %835 = vadd.xlane.f32.xlu0 %v834_v27 }
 0xcba   :  { %v837_v29 = vsel %vm124_vm2, %v1827_v28, 0.0 }
 0xcbb   :  { %838 = vadd.xlane.f32.xlu1 %v837_v29 }
 0xcbf   :  { %v1829_v30 = vpop.eup %1828 }
 0xcc0   :  { %v959_v31 = vsel %vm124_vm2, %v1829_v30, 0.0 }
 0xcc1   :  { %v1831_v32 = vpop.eup %1830  ;;  %960 = vadd.xlane.f32.xlu0 %v959_v31 }
 0xcc2   :  { %v962_v33 = vsel %vm124_vm2, %v1831_v32, 0.0 }
 0xcc3   :  { %963 = vadd.xlane.f32.xlu1 %v962_v33  ;;  %v1787_v33 = vld [vmem:[%s2315_s6 + $0x18] sm:$0xff]  }
 0xcd4   :  { %970 = vrot.lane.b32.xlu1 %v2150_v46, %s1883_s1 }
 0xcd7   :  { %845 = vrot.lane.b32.xlu0 %v2150_v46, %s1884_s24 }
 0xd46   :  { %v836_v39 = vpop.xlane.xlu0 %835 }
 0xd47   :  { %1832 = vrcp.f32 %v836_v39 }
 0xd48   :  { %v839_v40 = vpop.xlane.xlu1 %838 }
 0xd49   :  { %1834 = vrcp.f32 %v839_v40 }
 0xd4e   :  { %v961_v41 = vpop.xlane.xlu0 %960 }
 0xd4f   :  { %1836 = vrcp.f32 %v961_v41 }
 0xd50   :  { %v964_v42 = vpop.xlane.xlu1 %963 }
 0xd51   :  { %v1833_v38 = vpop.eup %1832  ;;  %1838 = vrcp.f32 %v964_v42 }
 0xd52   :  { %v846_v43 = vpop.permute.xlu0 %845  ;;  %v842_v45 = vmul.f32 %v1833_v38, %v1825_v24 }
 0xd53   :  { %v1835_v44 = vpop.eup %1834  ;;  %1692 = vmatpush3.bf16.msra.mxu1 %v846_v43 }
 0xd54   :  { %v843_v47 = vmul.f32 %v1835_v44, %v1827_v28  ;;  %1703 = vmatprep.subr.bf16.mxu1 %v1878_v1  ;;  %v971_v49 = vpop.permute.xlu1 %970 }
 0xd56   :  { %v844_v48 = vpack.c.bf16 %v843_v47, %v842_v45  ;;  %v1124_v45 = vrot.slane %v2210_v11, %v477_v5  ;;  %v1788_v5 = vld [vmem:[%s2317_s8 + $0x20] sm:$0xff]  }
 0xd58   :  { %1694 = vmatmul.mubr.msk.bf16.vlgmr.msra.gmra.mrb[16].mxu1 %vm124_vm2, %v844_v48 }
 0xd59   :  { %v1837_v46 = vpop.eup %1836  ;;  %1704 = vmatpush3.bf16.msra.mxu1 %v971_v49  ;;  %1705 = vmatprep.mubr.msk.bf16.mxu1 %vm1879_vm0, %v1878_v1 }
 0xd5a   :  { %1717 = vmatprep.subr.bf16.mxu1 %v1878_v1  ;;  %v967_v51 = vmul.f32 %v1837_v46, %v1829_v30 }
 0xd5b   :  { %v1839_v50 = vpop.eup %1838 }
 0xd5c   :  { %v968_v52 = vmul.f32 %v1839_v50, %v1831_v32  ;;  %v1130_v50 = vrot.slane %v2210_v11, %v483_v9  ;;  %v1789_v9 = vld [vmem:[%s2317_s8 + $0x28] sm:$0xff]  }
 0xd5e   :  { %v969_v54 = vpack.c.bf16 %v968_v52, %v967_v51 }
 0xd60   :  { %1706 = vmatmul.mubr.msk.bf16.vlgmr.msra.gmra.mrb[20].mxu1 %vm124_vm2, %v969_v54 }
 0xd61   :  { %1721 = vmatprep.mubr.msk.bf16.mxu1 %vm1879_vm0, %v1878_v1 }
 0xe2b   :  { %v885_v56 = vpop.f32.mrb[16].mxu1 }
 0xe2c   :  { %v1695_v57 = vpop.f32.mrb[17].mxu1 }
 0xe2d   :  { %v888_v3 = vpop.f32.mrb[18].mxu1  ;;  %v1791_v57 = vld [vmem:[%s2317_s8 + $0x38] sm:$0xff]  }
 0xe2e   :  { %v1696_v4 = vpop.f32.mrb[19].mxu1 }
 0xe33   :  { %v1010_v59 = vpop.f32.mrb[20].mxu1 }
 0xe34   :  { %v1707_v60 = vpop.f32.mrb[21].mxu1 }
 0xe35   :  { %v1013_v61 = vpop.f32.mrb[22].mxu1 }
 0xe36   :  { %v1767_v62 = vpack.i.bf16 %v1013_v61, %v1010_v59  ;;  %v1708_v63 = vpop.f32.mrb[23].mxu1 }
 0xe38   :  { %1768 = vrot.lane.b32.xlu1 %v1767_v62, %s1885_s29 }
 0xeaa   :  { %v1769_v0 = vpop.permute.xlu1 %1768 }
 0xeab   :  { %v1771_v2 = vunpack.i.h.bf16 %v1769_v0  ;;  %v1770_v6 = vunpack.i.l.bf16 %v1769_v0 }
 0xead   :  { %v1026_v7 = vsel %vm124_vm2, %v888_v3, %v1771_v2  ;;  %v1025_v8 = vsel %vm124_vm2, %v885_v56, %v1770_v6  ;;  %v1790_v56 = vld [vmem:[%s2317_s8 + $0x30] sm:$0xff]  }
 0xeae   :  { %v1027_v10 = vpack.c.bf16 %v1026_v7, %v1025_v8 }
 0xeb0   :  { %1714 = vmatmul.mubr.msk.bf16.vlgmr.msra.gmra.mrb[28].mxu0 %vm75_vm1, %v1027_v10 }
 0xeb1   :  { %1733 = vmatprep.mubr.msk.bf16.mxu0 %vm1879_vm0, %v1878_v1  ;;  %1726 = vmatpush3.bf16.msra.mxu0 %v1788_v5  ;;  %v1334_v5 = vrot.slane %v2210_v11, %v685_v23  ;;  %v1795_v23 = vld [vmem:[%s2320_s11 + $0x8] sm:$0xff]   ;;  %s1886_s11 = smov [#allocation3]  }
 0xeb2   :  { %1727 = vmatprep.subr.bf16.mxu0 %v1878_v1  ;;  %s1488_s1 = sshll.u32 %s1886_s11, 4  ;;  %s1489_s1 = int_to_ptr.vmem [resolvable:$true] %s1488_s1 }
 0xeb3   :  { %p1859_p1 = scmp.lt.s32.totalorder %s1489_s1, %s1489_s1 }
 0xeb5   :  { %1728 = vmatpush3.bf16.msra.mxu0 %v1789_v9 }
 0xeb6   :  { %1729 = vmatprep.subr.bf16.mxu0 %v1878_v1 }
 0xeb9   :  { %1730 = vmatpush3.bf16.msra.mxu0 %v1790_v56  ;;  %v1340_v56 = vrot.slane %v2210_v11, %v691_v26  ;;  %v1559_v26 = vld [vmem:[%s2318_s9] ss:$0 sm:$0xff]  ;;  %s1854_s9 = scalar_lea.vmem %s1489_s1, 32 }
 0xeba   :  { %1731 = vmatprep.subr.bf16.mxu0 %v1878_v1  ;;  %p1855_p0 = scmp.ne.s32.totalorder %s1489_s1, %s1854_s9  ;;  %p1860_p2 = scmp.lt.s32.totalorder %s1854_s9, %s1854_s9 }
 0xebc   :  { %p1861_p3 = por %p1860_p2, %p1859_p1 }
 0xebd   :  { %1732 = vmatpush3.bf16.msra.mxu0 %v1791_v57 }
 0xebe   :  { %p1862_p4 = pnand %p1861_p3, %p1855_p0 }
 0xf83   :  { %v1086_v13 = vpop.f32.mrb[28].mxu0 }
 0xf84   :  { %v1087_v14 = vadd.f32 %v1086_v13, %v1036_v12  ;;  %v1715_v15 = vpop.f32.mrb[29].mxu0 }
 0xf85   :  { %v1089_v16 = vpop.f32.mrb[30].mxu0 }
 0xf86   :  { %v1090_v17 = vadd.f32 %v1089_v16, %v1036_v12  ;;  %v1716_v18 = vpop.f32.mrb[31].mxu0  ;;  %v1093_v19 = vadd.f32 %v1087_v14, %v2138_v34 }
 0xf88   :  { %v1095_v21 = vsel %vm75_vm1, %v1093_v19, 0.0  ;;  %v1094_v20 = vadd.f32 %v1090_v17, %v2140_v35  ;;  %v1786_v35 = vld [vmem:[%s2315_s6 + $0x10] sm:$0xff]  }
 0xf89   :  { %1096 = vadd.xlane.f32.xlu0 %v1095_v21  ;;  %1718 = vmatpush3.bf16.msra.mxu1 %v1786_v35 }
 0xf8a   :  { %v1098_v22 = vsel %vm75_vm1, %v1094_v20, 0.0  ;;  %1719 = vmatprep.subr.bf16.mxu1 %v1878_v1 }
 0xf8b   :  { %1099 = vadd.xlane.f32.xlu1 %v1098_v22 }
 0xf8d   :  { %1720 = vmatpush3.bf16.msra.mxu1 %v1787_v33 }
 0xf8e   :  { %1737 = vmatprep.subr.bf16.mxu1 %v1878_v1 }
0x1016   :  { %v1097_v25 = vpop.xlane.xlu0 %1096 }
0x1017   :  { %v1101_v24 = vmul.f32 0.03125, %v1097_v25 }
0x1018   :  { %v1100_v27 = vpop.xlane.xlu1 %1099 }
0x1019   :  { %v1103_v37 = vsub.f32 %v1093_v19, %v1101_v24  ;;  %v1102_v28 = vmul.f32 0.03125, %v1100_v27  ;;  %v1234_v24 = vrot.slane %v2210_v11, %v584_v53 }
0x101b   :  { %v1104_v29 = vsub.f32 %v1094_v20, %v1102_v28  ;;  %v1105_v30 = vmul.f32 %v1103_v37, %v1103_v37 }
0x101d   :  { %v1107_v31 = vsel %vm75_vm1, %v1105_v30, 0.0  ;;  %v1106_v32 = vmul.f32 %v1104_v29, %v1104_v29 }
0x101e   :  { %1108 = vadd.xlane.f32.xlu0 %v1107_v31 }
0x101f   :  { %v1110_v34 = vsel %vm75_vm1, %v1106_v32, 0.0 }
0x1022   :  { %1111 = vadd.xlane.f32.xlu0 %v1110_v34 }
0x10ab   :  { %v1109_v39 = vpop.xlane.xlu0 %1108 }
0x10ac   :  { %v1113_v40 = vmul.f32 0.03125, %v1109_v39 }
0x10ae   :  { %v1115_v41 = vadd.f32 1e-12, %v1113_v40 }
0x10af   :  { %v1112_v42 = vpop.xlane.xlu0 %1111 }
0x10b0   :  { %1840 = vrsqrt.f32 %v1115_v41  ;;  %v1114_v38 = vmul.f32 0.03125, %v1112_v42 }
0x10b2   :  { %v1116_v43 = vadd.f32 1e-12, %v1114_v38 }
0x10b4   :  { %1842 = vrsqrt.f32 %v1116_v43 }
0x10ba   :  { %v1841_v44 = vpop.eup %1840 }
0x10bb   :  { %v1119_v47 = vmul.f32 %v1841_v44, %v1103_v37 }
0x10bd   :  { %v1125_v49 = vmul.f32 %v1124_v45, %v1119_v47 }
0x10be   :  { %v1843_v48 = vpop.eup %1842 }
0x10bf   :  { %v1120_v46 = vmul.f32 %v1843_v48, %v1104_v29  ;;  %v1131_v52 = vadd.f32 %v1130_v50, %v1125_v49  ;;  %v1792_v48 = vld [vmem:[%s2319_s10] sm:$0xff]   ;;  %v1793_v49 = vld [vmem:[%s2319_s10 + $0x8] sm:$0xff]  }
0x10c1   :  { %v1126_v51 = vmul.f32 %v1124_v45, %v1120_v46 }
0x10c3   :  { %v1132_v54 = vadd.f32 %v1130_v50, %v1126_v51 }
0x10c5   :  { %v1133_v55 = vpack.c.bf16 %v1132_v54, %v1131_v52 }
0x10c7   :  { %1722 = vmatmul.mubr.msk.bf16.vlgmr.msra.gmra.mrb[24].mxu1 %vm75_vm1, %v1133_v55 }
0x10c8   :  { %1741 = vmatprep.mubr.msk.bf16.mxu1 %vm1879_vm0, %v1878_v1  ;;  %1738 = vmatpush3.bf16.msra.mxu1 %v1792_v48 }
0x10c9   :  { %1739 = vmatprep.subr.bf16.mxu1 %v1878_v1 }
0x10cc   :  { %1740 = vmatpush3.bf16.msra.mxu1 %v1793_v49 }
0x10cd   :  { %1745 = vmatprep.subr.bf16.mxu1 %v1878_v1 }
0x119a   :  { %v1196_v3 = vpop.f32.mrb[24].mxu1 }
0x119b   :  { %v1197_v4 = vadd.f32 %v1542_v58, %v1196_v3  ;;  %v1723_v59 = vpop.f32.mrb[25].mxu1 }
0x119c   :  { %v1199_v60 = vpop.f32.mrb[26].mxu1 }
0x119d   :  { %v1203_v61 = vmul.f32 %v1197_v4, %v1197_v4  ;;  %v1200_v62 = vadd.f32 %v1542_v58, %v1199_v60  ;;  %v1724_v63 = vpop.f32.mrb[27].mxu1 }
0x119f   :  { %v1205_v0 = vmul.f32 %v1203_v61, %v1197_v4  ;;  %v1204_v2 = vmul.f32 %v1200_v62, %v1200_v62 }
0x11a1   :  { %v1207_v6 = vmul.f32 0.044715, %v1205_v0  ;;  %v1206_v7 = vmul.f32 %v1204_v2, %v1200_v62 }
0x11a3   :  { %v1209_v8 = vadd.f32 %v1207_v6, %v1197_v4  ;;  %v1208_v10 = vmul.f32 0.044715, %v1206_v7 }
0x11a5   :  { %v1211_v12 = vmul.f32 0.7978846, %v1209_v8  ;;  %v1210_v13 = vadd.f32 %v1208_v10, %v1200_v62 }
0x11a7   :  { %1844 = vtanh.f32 %v1211_v12  ;;  %v1212_v14 = vmul.f32 0.7978846, %v1210_v13 }
0x11a9   :  { %1846 = vtanh.f32 %v1212_v14 }
0x11b1   :  { %v1845_v15 = vpop.eup %1844 }
0x11b2   :  { %v1215_v16 = vadd.f32 1.0, %v1845_v15 }
0x11b3   :  { %v1847_v17 = vpop.eup %1846 }
0x11b4   :  { %v1217_v18 = vmul.f32 0.5, %v1215_v16  ;;  %v1216_v19 = vadd.f32 1.0, %v1847_v17 }
0x11b6   :  { %v1218_v21 = vmul.f32 0.5, %v1216_v19  ;;  %v1219_v20 = vmul.f32 %v1217_v18, %v1197_v4 }
0x11b8   :  { %v1220_v22 = vmul.f32 %v1218_v21, %v1200_v62 }
0x11ba   :  { %v1221_v25 = vpack.c.bf16 %v1220_v22, %v1219_v20 }
0x11bc   :  { %1734 = vmatmul.mubr.msk.bf16.vlgmr.msra.gmra.mrb[32].mxu0 %vm610_vm3, %v1221_v25 }
0x128f   :  { %v1296_v27 = vpop.f32.mrb[32].mxu0 }
0x1290   :  { %v1297_v37 = vadd.f32 %v1296_v27, %v1234_v24  ;;  %v1735_v28 = vpop.f32.mrb[33].mxu0 }
0x1291   :  { %v1299_v29 = vpop.f32.mrb[34].mxu0 }
0x1292   :  { %v1300_v30 = vadd.f32 %v1299_v29, %v1234_v24  ;;  %v1736_v31 = vpop.f32.mrb[35].mxu0  ;;  %v1303_v32 = vadd.f32 %v1297_v37, %v1131_v52 }
0x1294   :  { %v1305_v34 = vsel %vm75_vm1, %v1303_v32, 0.0  ;;  %v1304_v35 = vadd.f32 %v1300_v30, %v1132_v54 }
0x1295   :  { %1306 = vadd.xlane.f32.xlu1 %v1305_v34 }
0x1296   :  { %v1308_v33 = vsel %vm75_vm1, %v1304_v35, 0.0 }
0x1297   :  { %1309 = vadd.xlane.f32.xlu0 %v1308_v33 }
0x1322   :  { %v1307_v39 = vpop.xlane.xlu1 %1306 }
0x1323   :  { %v1311_v40 = vmul.f32 0.03125, %v1307_v39 }
0x1324   :  { %v1310_v41 = vpop.xlane.xlu0 %1309 }
0x1325   :  { %v1313_v42 = vsub.f32 %v1303_v32, %v1311_v40  ;;  %v1312_v38 = vmul.f32 0.03125, %v1310_v41 }
0x1327   :  { %v1314_v53 = vsub.f32 %v1304_v35, %v1312_v38  ;;  %v1315_v43 = vmul.f32 %v1313_v42, %v1313_v42 }
0x1329   :  { %v1317_v44 = vsel %vm75_vm1, %v1315_v43, 0.0  ;;  %v1316_v45 = vmul.f32 %v1314_v53, %v1314_v53 }
0x132a   :  { %1318 = vadd.xlane.f32.xlu1 %v1317_v44 }
0x132b   :  { %v1320_v47 = vsel %vm75_vm1, %v1316_v45, 0.0 }
0x132c   :  { %1321 = vadd.xlane.f32.xlu0 %v1320_v47 }
0x13b7   :  { %v1319_v46 = vpop.xlane.xlu1 %1318 }
0x13b8   :  { %v1323_v50 = vmul.f32 0.03125, %v1319_v46 }
0x13b9   :  { %v1322_v51 = vpop.xlane.xlu0 %1321 }
0x13ba   :  { %v1325_v52 = vadd.f32 1e-12, %v1323_v50  ;;  %v1324_v54 = vmul.f32 0.03125, %v1322_v51 }
0x13bc   :  { %1848 = vrsqrt.f32 %v1325_v52  ;;  %v1326_v55 = vadd.f32 1e-12, %v1324_v54 }
0x13be   :  { %1850 = vrsqrt.f32 %v1326_v55 }
0x13c6   :  { %v1849_v9 = vpop.eup %1848 }
0x13c7   :  { %v1329_v57 = vmul.f32 %v1849_v9, %v1313_v42 }
0x13c8   :  { %v1851_v58 = vpop.eup %1850 }
0x13c9   :  { %v1335_v3 = vmul.f32 %v1334_v5, %v1329_v57  ;;  %v1330_v4 = vmul.f32 %v1851_v58, %v1314_v53 }
0x13cb   :  { %v1341_v59 = vadd.f32 %v1340_v56, %v1335_v3  ;;  %v1336_v60 = vmul.f32 %v1334_v5, %v1330_v4 }
0x13cd   :  { %1343 = vst.msk [vmem:[#allocation2] sm:$0xff] %vm75_vm1, %v1341_v59  ;;  %v1342_v61 = vadd.f32 %v1340_v56, %v1336_v60 }
0x13cf   :  { %1344 = vst.msk [vmem:[#allocation2 + $0x8] sm:$0xff] %vm75_vm1, %v1342_v61 }
0x13d6   :  { %v1345_v62 = vld [vmem:[#allocation2] ss:$8 sm:$0x3] }
0x13d7   :  { %v1346_v63 = vpack.c.bf16 %v1345_v62, %v1345_v62 }
0x13d9   :  { %1742 = vmatmul.mubr.msk.bf16.vlgmr.msra.gmra.mrb[28].mxu1 %vm75_vm1, %v1346_v63 }
0x13da   :  { %1749 = vmatprep.mubr.msk.bf16.mxu1 %vm1879_vm0, %v1878_v1  ;;  %1746 = vmatpush3.bf16.msra.mxu1 %v1794_v36 }
0x13db   :  { %1747 = vmatprep.subr.bf16.mxu1 %v1878_v1  ;;  %v1563_v1 = vld [vmem:[%s2321_s12] ss:$0 sm:$0xff] }
0x13de   :  { %1748 = vmatpush3.bf16.msra.mxu1 %v1795_v23 }
0x14ac   :  { %v1407_v11 = vpop.f32.mrb[28].mxu1 }
0x14ad   :  { %v1408_v0 = vadd.f32 %v1559_v26, %v1407_v11  ;;  %v1743_v2 = vpop.f32.mrb[29].mxu1 }
0x14ae   :  { %v1410_v6 = vpop.f32.mrb[30].mxu1 }
0x14af   :  { %1852 = vtanh.f32 %v1408_v0  ;;  %v1744_v7 = vpop.f32.mrb[31].mxu1 }
0x14b9   :  { %v1853_v8 = vpop.eup %1852 }
0x14ba   :  { %v1414_v10 = vpack.c.bf16 %v1853_v8, %v1853_v8 }
0x14bc   :  { %1750 = vmatmul.mubr.msk.bf16.vlgmr.msra.gmra.mrb[32].mxu1 %vm75_vm1, %v1414_v10 }
0x158f   :  { %v1475_v12 = vpop.f32.mrb[32].mxu1 }
0x1590   :  { %v1476_v13 = vadd.f32 %v1563_v1, %v1475_v12  ;;  %v1751_v14 = vpop.f32.mrb[33].mxu1 }
0x1591   :  { %v1478_v15 = vpop.f32.mrb[34].mxu1 }
0x1592   :  { %1481 = vst [vmem:[#allocation3] sm:$0x3] %v1476_v13  ;;  %v1752_v16 = vpop.f32.mrb[35].mxu1 }
0x1593   :  { %1865 = shalt.err (!%p1862_p4)
}
0x1594   :  { %s1866_s12 = scalar_lea.hbm %s2322_s13, 32 }
0x1595   :  { %p1867_p5 = scmp.ne.s32.totalorder %s2322_s13, %s1866_s12  ;;  %p1870_p6 = scmp.lt.u32.totalorder %s1866_s12, %s2322_s13 }
0x1597   :  { %p1872_p7 = pnand %p1870_p6, %p1867_p5 }
0x1599   :  { %1875 = shalt.err (!%p1872_p7)
}
0x159a   :  { %1491 = dma.vmem_to_hbm [thread:$0]  %s1489_s1, 32, %s2322_s13, [#allocation4]  }
0x159b   :  { %1876 = dma.done.wait [#allocation4], 32  }
0x159c   :  { %1877 = vsyncadd [#allocation4], 4294967264 }
0x159d   :  { %1495 = vsyncpa [#allocation4], 1 }

</bundles_post_ra>
